<compile_context>
chip_gen: v7x
topology: tpu7x:2x2x1
jax: 0.10.0
libtpu: 0.0.40
codegen_flags: <defaults>
</compile_context>

<pallas_src>
import functools

import jax
import jax.numpy as jnp
from jax.experimental import pallas as pl
from jax.experimental.pallas import tpu as pltpu

_LANE = 128


def _round_up(v, m):
    return (v + m - 1) // m * m


def _vmem_capacity_bytes():
    """Per-core VMEM capacity (generation aware), conservative fallback."""
    try:
        cap = getattr(pltpu.get_tpu_info(), "vmem_capacity_bytes", None)
        if cap:
            return int(cap)
    except Exception:
        pass
    return 64 * 1024 * 1024  # v7x per-TC size; safe lower bound everywhere


def _tensorcores_per_chip():
    """Heuristic: v7x has 2 TensorCores per chip, v5e/v6e have 1."""
    try:
        kind = jax.devices()[0].device_kind.lower()
    except Exception:
        kind = ""
    return 2 if ("v7" in kind or "7x" in kind) else 1


def _vmem_footprint(tm, n_pad, h_p, o_p):
    """Rough VMEM bytes: double-buffered inputs/outputs + persistent scratch."""
    bf, f32 = 2, 4
    a_hat = 2 * tm * n_pad * bf                         # streamed A_hat tiles
    xw1 = 2 * n_pad * h_p * bf                          # resident XW1 (bf16)
    consts = 2 * (h_p * o_p * bf + (h_p + o_p) * f32)   # W2, b1, b2
    out = 2 * tm * max(h_p, o_p) * f32                  # output row tile
    h_scr = n_pad * h_p * bf                            # h scratch (fused path)
    return a_hat + xw1 + consts + out + h_scr


def _pick_tm(n_pad128, h_p, o_p, budget):
    """Largest 128-multiple row tile dividing n_pad that fits the budget.

    n_pad128 itself is the first candidate: when the whole A_hat fits, the
    fused path keeps it resident in VMEM across both layers (constant block
    index => it is DMA'd from HBM exactly once).
    """
    cands = []
    for tm in (n_pad128, 2048, 1024, 512, 256, 128):
        if tm not in cands:
            cands.append(tm)
    for tm in cands:
        if tm <= n_pad128 and tm % _LANE == 0 and n_pad128 % tm == 0:
            if _vmem_footprint(tm, n_pad128, h_p, o_p) <= budget:
                return tm
    return 128


# ----------------------------- kernels --------------------------------------


def _fused_gcn_kernel(a_ref, xw1_ref, b1_ref, w2_ref, b2_ref,
                      o_ref, h_ref, *, tm):
    """Fused 2-layer GCN.  grid = (layer, row_tile), layer outermost.

      layer 0:  h[tile]   = relu( A_hat[tile, :] @ XW1 + b1 )   (h in VMEM)
      layer 1:  out[tile] = (A_hat[tile, :] @ h) @ W2 + b2

    All matmuls run in bf16 on the MXU with f32 accumulation; the bias / relu
    epilogue stays f32 on the VPU.
    """
    layer = pl.program_id(0)
    i = pl.program_id(1)

    @pl.when(layer == 0)
    def _():
        acc = jnp.dot(a_ref[...], xw1_ref[...],
                      preferred_element_type=jnp.float32)
        acc = jnp.maximum(acc + b1_ref[...], 0.0)
        row0 = pl.multiple_of(i * tm, tm)
        h_ref[pl.ds(row0, tm), :] = acc.astype(h_ref.dtype)

    @pl.when(layer == 1)
    def _():
        agg = jnp.dot(a_ref[...], h_ref[...],
                      preferred_element_type=jnp.float32)
        out = jnp.dot(agg.astype(w2_ref.dtype), w2_ref[...],
                      preferred_element_type=jnp.float32)
        o_ref[...] = (out + b2_ref[...]).astype(o_ref.dtype)


def _gcn_layer0_kernel(a_ref, xw1_ref, b1_ref, h_ref):
    """h[tile] = relu(A_hat[tile, :] @ XW1 + b1)  (split path, bf16 output)."""
    acc = jnp.dot(a_ref[...], xw1_ref[...], preferred_element_type=jnp.float32)
    h_ref[...] = jnp.maximum(acc + b1_ref[...], 0.0).astype(h_ref.dtype)


def _gcn_layer1_kernel(a_ref, h_ref, w2_ref, b2_ref, o_ref):
    """out[tile] = (A_hat[tile, :] @ h) @ W2 + b2  (split path)."""
    agg = jnp.dot(a_ref[...], h_ref[...], preferred_element_type=jnp.float32)
    out = jnp.dot(agg.astype(w2_ref.dtype), w2_ref[...],
                  preferred_element_type=jnp.float32)
    o_ref[...] = (out + b2_ref[...]).astype(o_ref.dtype)


# ----------------------------- wrapper --------------------------------------


def build_normalized_adjacency(edge_index, num_nodes, n_pad=None,
                               dtype=jnp.float32):
    """Dense A_hat = D^{-1/2} (A + I) D^{-1/2}, matching PyG gcn_norm.

    Built directly in the padded (n_pad, n_pad) buffer and cast to `dtype` in
    one shot; padded rows/cols stay exactly zero.  edge_index: int32 [2, E];
    messages flow source -> target (A[dst, src] = 1); duplicate edges sum.
    """
    if n_pad is None:
        n_pad = num_nodes
    src, dst = edge_index[0], edge_index[1]
    loop = jnp.arange(num_nodes, dtype=edge_index.dtype)
    src = jnp.concatenate([src, loop])
    dst = jnp.concatenate([dst, loop])
    a = jnp.zeros((n_pad, n_pad), jnp.float32).at[dst, src].add(1.0)
    deg = a.sum(axis=1)
    dinv = jnp.where(deg > 0, jax.lax.rsqrt(deg), 0.0)
    return (dinv[:, None] * a * dinv[None, :]).astype(dtype)


def gcn_forward(x, edge_index, params, *, tm=None, fuse_layers=None):
    """Forward pass of the 2-layer GCN (eval mode: dropout = identity)."""
    n, _ = x.shape
    h_ch = params["w1"].shape[1]
    o_ch = params["w2"].shape[1]

    # Lane-dense (multiple-of-128) padded channel dims.
    h_p = _round_up(h_ch, _LANE)
    o_p = _round_up(o_ch, _LANE)

    cap = _vmem_capacity_bytes()
    budget = cap * 3 // 4              # ~48 MiB on v7x, ~96 MiB on v5e/v6e

    n_pad128 = _round_up(n, _LANE)
    if tm is None:
        tm = _pick_tm(n_pad128, h_p, o_p, budget)
    n_pad = _round_up(n, tm)
    num_tiles = n_pad // tm

    if fuse_layers is None:
        # 2 TCs/chip (v7x): de-fuse so the row-tile axis can be 'parallel'.
        fuse_layers = _tensorcores_per_chip() == 1

    # Dominant operand in bf16, built directly into its padded buffer.
    a_p = build_normalized_adjacency(edge_index, n, n_pad, jnp.bfloat16)

    # Hoisted feature transform: XW1 = X @ W1 (tiny, plain XLA), padded bf16.
    xw1 = jnp.dot(x, params["w1"], preferred_element_type=jnp.float32)
    xw1_p = jnp.zeros((n_pad, h_p), jnp.bfloat16).at[:n, :h_ch].set(
        xw1.astype(jnp.bfloat16))
    b1_p = jnp.zeros((1, h_p), jnp.float32).at[0, :h_ch].set(params["b1"])
    w2_p = jnp.zeros((h_p, o_p), jnp.bfloat16).at[:h_ch, :o_ch].set(
        params["w2"].astype(jnp.bfloat16))
    b2_p = jnp.zeros((1, o_p), jnp.float32).at[0, :o_ch].set(params["b2"])

    footprint = _vmem_footprint(tm, n_pad, h_p, o_p)
    vmem_limit = int(min(cap * 7 // 8, max(2 * footprint, 32 * 1024 * 1024)))

    agg_flops = 2 * n_pad * n_pad * h_p          # one A_hat aggregation
    mix_flops = 2 * n_pad * h_p * o_p            # (A_hat @ h) @ W2
    a_bytes = n_pad * n_pad * 2                  # one A_hat pass (bf16)

    if fuse_layers:
        kernel = functools.partial(_fused_gcn_kernel, tm=tm)
        out_p = pl.pallas_call(
            kernel,
            out_shape=jax.ShapeDtypeStruct((n_pad, o_p), jnp.float32),
            grid=(2, num_tiles),                            # (layer, row tile)
            in_specs=[
                pl.BlockSpec((tm, n_pad), lambda l, i: (i, 0)),   # A_hat tile
                pl.BlockSpec((n_pad, h_p), lambda l, i: (0, 0)),  # XW1
                pl.BlockSpec((1, h_p), lambda l, i: (0, 0)),      # b1
                pl.BlockSpec((h_p, o_p), lambda l, i: (0, 0)),    # W2
                pl.BlockSpec((1, o_p), lambda l, i: (0, 0)),      # b2
            ],
            # Layer 0 steps all map to output block 0 (never written there);
            # the first writeback of block 0 happens only after layer-1 step 0
            # has filled it (sequential 'arbitrary' semantics).
            out_specs=pl.BlockSpec((tm, o_p), lambda l, i: (i * l, 0)),
            scratch_shapes=[
                pltpu.VMEM((n_pad, h_p), jnp.bfloat16),   # h (VMEM resident)
            ],
            compiler_params=pltpu.CompilerParams(
                # Row-tile axis cannot be 'parallel': layer 1 consumes the
                # full h scratch written by every layer-0 row tile.
                dimension_semantics=("arbitrary", "arbitrary"),
                vmem_limit_bytes=vmem_limit),
            cost_estimate=pl.CostEstimate(
                flops=int(2 * agg_flops + mix_flops), transcendentals=0,
                bytes_accessed=int(2 * a_bytes
                                   + n_pad * (h_p * 2 + o_p * 4))),
        )(a_p, xw1_p, b1_p, w2_p, b2_p)
    else:
        common = dict(compiler_params=pltpu.CompilerParams(
            dimension_semantics=("parallel",),
            vmem_limit_bytes=vmem_limit))
        h_act = pl.pallas_call(
            _gcn_layer0_kernel,
            out_shape=jax.ShapeDtypeStruct((n_pad, h_p), jnp.bfloat16),
            grid=(num_tiles,),
            in_specs=[
                pl.BlockSpec((tm, n_pad), lambda i: (i, 0)),      # A_hat tile
                pl.BlockSpec((n_pad, h_p), lambda i: (0, 0)),     # XW1
                pl.BlockSpec((1, h_p), lambda i: (0, 0)),         # b1
            ],
            out_specs=pl.BlockSpec((tm, h_p), lambda i: (i, 0)),
            cost_estimate=pl.CostEstimate(
                flops=int(agg_flops), transcendentals=0,
                bytes_accessed=int(a_bytes + 2 * n_pad * h_p * 2)),
            **common,
        )(a_p, xw1_p, b1_p)
        out_p = pl.pallas_call(
            _gcn_layer1_kernel,
            out_shape=jax.ShapeDtypeStruct((n_pad, o_p), jnp.float32),
            grid=(num_tiles,),
            in_specs=[
                pl.BlockSpec((tm, n_pad), lambda i: (i, 0)),      # A_hat tile
                pl.BlockSpec((n_pad, h_p), lambda i: (0, 0)),     # h
                pl.BlockSpec((h_p, o_p), lambda i: (0, 0)),       # W2
                pl.BlockSpec((1, o_p), lambda i: (0, 0)),         # b2
            ],
            out_specs=pl.BlockSpec((tm, o_p), lambda i: (i, 0)),
            cost_estimate=pl.CostEstimate(
                flops=int(agg_flops + mix_flops), transcendentals=0,
                bytes_accessed=int(a_bytes + n_pad * (h_p * 2 + o_p * 4))),
            **common,
        )(a_p, h_act, w2_p, b2_p)

    return out_p[:n, :o_ch]


def init_params(key, in_channels, hidden_channels, out_channels):
    k1, k2, k3, k4 = jax.random.split(key, 4)
    # GCNConv's Linear weight is [out, in]; stored transposed as [in, out].
    w1 = jax.random.normal(k1, (in_channels, hidden_channels), jnp.float32) * 0.1
    w2 = jax.random.normal(k2, (hidden_channels, out_channels), jnp.float32) * 0.1
    # Small nonzero biases so the bias path is actually exercised numerically.
    b1 = jax.random.normal(k3, (hidden_channels,), jnp.float32) * 0.01
    b2 = jax.random.normal(k4, (out_channels,), jnp.float32) * 0.01
    return {"w1": w1, "b1": b1, "w2": w2, "b2": b2}


if __name__ == "__main__":
    N = 512           # number of nodes
    E = 2048          # number of directed edges
    IN_CH = 32
    HIDDEN = 32
    OUT_CH = 16

    key = jax.random.PRNGKey(0)
    k_x, k_e, k_p = jax.random.split(key, 3)

    x = jax.random.normal(k_x, (N, IN_CH), jnp.float32)
    edge_index = jax.random.randint(k_e, (2, E), 0, N, dtype=jnp.int32)
    params = init_params(k_p, IN_CH, HIDDEN, OUT_CH)

    # Pure-JAX f32 reference; kernel uses bf16 operands with f32 accumulation,
    # so compare with a loose tolerance.
    a_f32 = build_normalized_adjacency(edge_index, N)
    h_star = jnp.maximum(a_f32 @ (x @ params["w1"]) + params["b1"], 0.0)
    ref = a_f32 @ (h_star @ params["w2"]) + params["b2"]

    # Exercise both execution paths (fused single-call and the 2-TC split
    # path) and both a multi-tile TM and the auto-picked (resident) TM.
    for fuse, tm in ((True, 128), (False, None)):
        out = gcn_forward(x, edge_index, params, tm=tm, fuse_layers=fuse)
        out = jax.block_until_ready(out)
        assert out.shape == (N, OUT_CH)
        assert out.dtype == jnp.float32
        err = float(jnp.max(jnp.abs(out - ref)))
        assert jnp.allclose(out, ref, atol=3e-2, rtol=3e-2), (fuse, tm, err)

    print("KERNEL_OK")
</pallas_src>

<mosaic_0001>
module attributes {stable_mosaic.version = 11 : i64} {
  func.func @_fused_gcn_kernel(%arg0: i32, %arg1: i32, %arg2: memref<128x512xbf16, #tpu.memory_space<vmem>>, %arg3: memref<512x128xbf16, #tpu.memory_space<vmem>>, %arg4: memref<1x128xf32, #tpu.memory_space<vmem>>, %arg5: memref<128x128xbf16, #tpu.memory_space<vmem>>, %arg6: memref<1x128xf32, #tpu.memory_space<vmem>>, %arg7: memref<128x128xf32, #tpu.memory_space<vmem>>, %arg8: memref<512x128xbf16, #tpu.memory_space<vmem>>) attributes {dimension_semantics = [#tpu.dimension_semantics<arbitrary>, #tpu.dimension_semantics<arbitrary>], iteration_bounds = array<i64: 2, 4>, scalar_prefetch = 0 : i64, scratch_operands = 1 : i64, tpu.core_type = #tpu.core_type<tc>, window_params = [{transform_indices = @transform_0, window_bounds = array<i64: 128, 512>}, {pipeline_mode = #tpu.pipeline_mode<synchronous>, transform_indices = @transform_1, window_bounds = array<i64: 512, 128>}, {pipeline_mode = #tpu.pipeline_mode<synchronous>, transform_indices = @transform_2, window_bounds = array<i64: 1, 128>}, {pipeline_mode = #tpu.pipeline_mode<synchronous>, transform_indices = @transform_3, window_bounds = array<i64: 128, 128>}, {pipeline_mode = #tpu.pipeline_mode<synchronous>, transform_indices = @transform_4, window_bounds = array<i64: 1, 128>}, {transform_indices = @transform_5, window_bounds = array<i64: 128, 128>}]} {
    %c0_i32 = arith.constant 0 : i32
    %0 = arith.cmpi eq, %arg0, %c0_i32 : i32
    %1 = arith.extui %0 : i1 to i32
    %c0_i32_0 = arith.constant 0 : i32
    %2 = arith.cmpi ne, %1, %c0_i32_0 : i32
    scf.if %2 {
      %c0 = arith.constant 0 : index
      %c0_2 = arith.constant 0 : index
      %6 = vector.load %arg2[%c0, %c0_2] : memref<128x512xbf16, #tpu.memory_space<vmem>>, vector<128x512xbf16>
      %c0_3 = arith.constant 0 : index
      %c0_4 = arith.constant 0 : index
      %7 = vector.load %arg3[%c0_3, %c0_4] : memref<512x128xbf16, #tpu.memory_space<vmem>>, vector<512x128xbf16>
      %cst = arith.constant dense<0.000000e+00> : vector<128x128xf32>
      %8 = tpu.matmul %6, %7, %cst {dimension_numbers = #tpu.dot_dimension_numbers<[1], [0], [0], [1], [0, 0, 1, 1], [], []>} : vector<128x512xbf16>, vector<512x128xbf16>, vector<128x128xf32> -> vector<128x128xf32>
      %c0_5 = arith.constant 0 : index
      %c0_6 = arith.constant 0 : index
      %9 = vector.load %arg4[%c0_5, %c0_6] : memref<1x128xf32, #tpu.memory_space<vmem>>, vector<1x128xf32>
      %10 = vector.broadcast %9 : vector<1x128xf32> to vector<128x128xf32>
      %11 = arith.addf %8, %10 : vector<128x128xf32>
      %cst_7 = arith.constant 0.000000e+00 : f32
      %12 = vector.broadcast %cst_7 : f32 to vector<128x128xf32>
      %13 = arith.maximumf %11, %12 : vector<128x128xf32>
      %c128_i32 = arith.constant 128 : i32
      %14 = arith.muli %arg1, %c128_i32 : i32
      %15 = tpu.assume_multiple %14, 128 : i32
      %16 = arith.truncf %13 : vector<128x128xf32> to vector<128x128xbf16>
      %17 = arith.index_cast %15 : i32 to index
      %c0_8 = arith.constant 0 : index
      %18 = vector.load %arg8[%17, %c0_8] : memref<512x128xbf16, #tpu.memory_space<vmem>>, vector<128x128xbf16>
      tpu.vector_store %arg8[%17, %c0_8], %16 {strides = array<i32>} : memref<512x128xbf16, #tpu.memory_space<vmem>>, vector<128x128xbf16>,
    } else {
    }
    %c1_i32 = arith.constant 1 : i32
    %3 = arith.cmpi eq, %arg0, %c1_i32 : i32
    %4 = arith.extui %3 : i1 to i32
    %c0_i32_1 = arith.constant 0 : i32
    %5 = arith.cmpi ne, %4, %c0_i32_1 : i32
    scf.if %5 {
      %c0 = arith.constant 0 : index
      %c0_2 = arith.constant 0 : index
      %6 = vector.load %arg2[%c0, %c0_2] : memref<128x512xbf16, #tpu.memory_space<vmem>>, vector<128x512xbf16>
      %c0_3 = arith.constant 0 : index
      %c0_4 = arith.constant 0 : index
      %7 = vector.load %arg8[%c0_3, %c0_4] : memref<512x128xbf16, #tpu.memory_space<vmem>>, vector<512x128xbf16>
      %cst = arith.constant dense<0.000000e+00> : vector<128x128xf32>
      %8 = tpu.matmul %6, %7, %cst {dimension_numbers = #tpu.dot_dimension_numbers<[1], [0], [0], [1], [0, 0, 1, 1], [], []>} : vector<128x512xbf16>, vector<512x128xbf16>, vector<128x128xf32> -> vector<128x128xf32>
      %9 = arith.truncf %8 : vector<128x128xf32> to vector<128x128xbf16>
      %c0_5 = arith.constant 0 : index
      %c0_6 = arith.constant 0 : index
      %10 = vector.load %arg5[%c0_5, %c0_6] : memref<128x128xbf16, #tpu.memory_space<vmem>>, vector<128x128xbf16>
      %cst_7 = arith.constant dense<0.000000e+00> : vector<128x128xf32>
      %11 = tpu.matmul %9, %10, %cst_7 {dimension_numbers = #tpu.dot_dimension_numbers<[1], [0], [0], [1], [0, 0, 1, 1], [], []>} : vector<128x128xbf16>, vector<128x128xbf16>, vector<128x128xf32> -> vector<128x128xf32>
      %c0_8 = arith.constant 0 : index
      %c0_9 = arith.constant 0 : index
      %12 = vector.load %arg6[%c0_8, %c0_9] : memref<1x128xf32, #tpu.memory_space<vmem>>, vector<1x128xf32>
      %13 = vector.broadcast %12 : vector<1x128xf32> to vector<128x128xf32>
      %14 = arith.addf %11, %13 : vector<128x128xf32>
      %c0_10 = arith.constant 0 : index
      %c0_11 = arith.constant 0 : index
      %15 = vector.load %arg7[%c0_10, %c0_11] : memref<128x128xf32, #tpu.memory_space<vmem>>, vector<128x128xf32>
      tpu.vector_store %arg7[%c0_10, %c0_11], %14 {strides = array<i32>} : memref<128x128xf32, #tpu.memory_space<vmem>>, vector<128x128xf32>,
    } else {
    }
    return
  }
  func.func @transform_0(%arg0: i32, %arg1: i32) -> (i32, i32) {
    %c0_i32 = arith.constant 0 : i32
    %c0_i32_0 = arith.constant 0 : i32
    return %arg1, %c0_i32 : i32, i32
  }
  func.func @transform_1(%arg0: i32, %arg1: i32) -> (i32, i32) {
    %c0_i32 = arith.constant 0 : i32
    %c0_i32_0 = arith.constant 0 : i32
    %c0_i32_1 = arith.constant 0 : i32
    return %c0_i32, %c0_i32_0 : i32, i32
  }
  func.func @transform_2(%arg0: i32, %arg1: i32) -> (i32, i32) {
    %c0_i32 = arith.constant 0 : i32
    %c0_i32_0 = arith.constant 0 : i32
    %c0_i32_1 = arith.constant 0 : i32
    return %c0_i32, %c0_i32_0 : i32, i32
  }
  func.func @transform_3(%arg0: i32, %arg1: i32) -> (i32, i32) {
    %c0_i32 = arith.constant 0 : i32
    %c0_i32_0 = arith.constant 0 : i32
    %c0_i32_1 = arith.constant 0 : i32
    return %c0_i32, %c0_i32_0 : i32, i32
  }
  func.func @transform_4(%arg0: i32, %arg1: i32) -> (i32, i32) {
    %c0_i32 = arith.constant 0 : i32
    %c0_i32_0 = arith.constant 0 : i32
    %c0_i32_1 = arith.constant 0 : i32
    return %c0_i32, %c0_i32_0 : i32, i32
  }
  func.func @transform_5(%arg0: i32, %arg1: i32) -> (i32, i32) {
    %0 = arith.muli %arg1, %arg0 : i32
    %c0_i32 = arith.constant 0 : i32
    %c0_i32_0 = arith.constant 0 : i32
    return %0, %c0_i32 : i32, i32
  }
}

</mosaic_0001>

<bundles_post_ra>
// kernel: tpu_custom_call.1
= control target key start
LH: loop header
LB: loop body
LE: loop exit
PB: predicated region body
PF: predicated region fallthrough
CT: control target
= control target key end

     0   :  { %s3112_s0 = inlined_call_operand.hbm [shape: bf16[512,512], index: 0, kind: input, shape index: {}]   ;;  %s3113_s1 = inlined_call_operand.hbm [shape: bf16[512,128], index: 1, kind: input, shape index: {}]   ;;  %s3114_s2 = inlined_call_operand.vmem [shape: f32[1,128], index: 2, kind: input, shape index: {}]   ;;  %s3115_s3 = inlined_call_operand.hbm [shape: bf16[128,128], index: 3, kind: input, shape index: {}]   ;;  %s3116_s4 = inlined_call_operand.vmem [shape: f32[1,128], index: 4, kind: input, shape index: {}]   ;;  %s3117_s5 = inlined_call_operand.hbm [shape: f32[512,128], index: 5, kind: output, shape index: {}]  }
   0x1   :  { %3129 = sst [smem:[#allocation17_spill]] %s3113_s1 }
   0x2   :  { %3130 = sst [smem:[#allocation18_spill]] %s3115_s3 }
   0x3   :  { %3131 = sst [smem:[#allocation19_spill]] %s3117_s5 }
   0x4   :  { %10 = vsyncpa [#allocation4], 0 }
   0x5   :  { %12 = vsyncpa [#allocation4 + $0x1], 0 }
   0x6   :  { %13 = vsyncpa [#allocation7], 0 }
   0x7   :  { %14 = vsyncpa [#allocation5], 0 }
   0x8   :  { %16 = vsyncpa [#allocation5 + $0x1], 0  ;;  %s2687_s18 = smov 0   ;;  %s2689_s19 = smov 0  }
   0x9   :  { %s2691_s20 = smov 0   ;;  %s2693_s21 = smov 0  }
   0xa   :  { %s2695_s22 = smov 0   ;;  %s2697_s23 = smov 0  }
   0xb   :  { %s2699_s24 = smov 0   ;;  %s2701_s25 = smov 0  }
   0xc   :  { %s2703_s26 = smov 0   ;;  %s2705_s27 = smov 0  }
   0xd   :  { %s2707_s28 = smov 0  }
   0xe LB: > { %3132 = sst [smem:[#allocation13_spill]] %s2605_s18  ;;  %s1715_s29 = sadd.s32 4294967295, %s2645_s28   ;;  %s2645_s28 = sphi %s2707_s28, %s22_s28   ;;  %s2641_s27 = sphi %s2705_s27, %s3165_s27   ;;  %s2637_s26 = sphi %s2703_s26, %s3164_s26   ;;  %s2633_s25 = sphi %s2701_s25, %s3156_s25   ;;  %s2629_s24 = sphi %s2699_s24, %s3163_s24   ;;  %s2625_s23 = sphi %s2697_s23, %s3162_s23   ;;  %s2621_s22 = sphi %s2695_s22, %s3161_s22   ;;  %s2617_s21 = sphi %s2693_s21, %s3160_s21   ;;  %s2613_s20 = sphi %s2691_s20, %s3159_s20   ;;  %s2609_s19 = sphi %s2689_s19, %s3158_s19   ;;  %s2605_s18 = sphi %s2687_s18, %s3157_s18  }
   0xf   : > { %3133 = sst [smem:[#allocation14_spill]] %s2641_s27  ;;  %s1716_s30 = sadd.s32 4294967294, %s2645_s28  }
  0x10   : > { %p54_p0 = scmp.ne.s32.totalorder %s2621_s22, %s2617_s21  ;;  %p2743_p1 = scmp.eq.s32.totalorder %s1715_s29, 0 }
  0x11   : > { %p163_p2 = scmp.ne.s32.totalorder %s2613_s20, %s2609_s19  ;;  %p164_p4 = scmp.eq.s32.totalorder %s1715_s29, 7 }
  0x12   : > { %s3134_s6 = scalar_select %p2743_p1, 1, 0 }
  0x13   : > { %p2752_p3 = por %p2743_p1, %p54_p0  ;;  %p169_p5 = scmp.ne.s32.totalorder %s2609_s19, %s2605_s18 }
  0x14   : > { %p170_p6 = scmp.eq.s32.totalorder %s1716_s30, 7  ;;  %p2758_p7 = por %p164_p4, %p163_p2 }
  0x15   : > { %s3135_s8 = scalar_select %p2752_p3, 1, 0 }
  0x16   : > { %s3136_s9 = scalar_select %p2758_p7, 1, 0 }
  0x17   : > { %p1717_p8 = scmp.ge.s32.totalorder %s2645_s28, 1  ;;  %p2763_p9 = por %p170_p6, %p169_p5 }
  0x18   : > { %3137 = sst [smem:[#allocation15_spill]] %s3136_s9  ;;  %p177_p10 = scmp.lt.s32.totalorder %s2645_s28, 9 }
  0x19   : > { %s3138_s10 = scalar_select %p2763_p9, 1, 0 }
  0x1a   : > { %p2768_p11 = pnand %p1717_p8, %p177_p10  ;;  %s2647_s12 = smov [#allocation6]  }
  0x1b   : > { %3139 = sst [smem:[#allocation16_spill]] %s3138_s10  ;;  %s189_s13 = sshll.u32 %s2647_s12, 4  ;;  %s190_s13 = int_to_ptr.vmem [resolvable:$true] %s189_s13 }
  0x1c   : > { %s3140_s11 = scalar_select %p2768_p11, 1, 0 }
  0x1d   : > { %p2180_p12 = pneg %p2768_p11  ;;  %s2648_s15 = smov [#allocation8]  }
  0x1e   : > { %s205_s16 = sshll.u32 %s2648_s15, 4  ;;  %s3142_s1 = sld [smem:[#allocation17_spill]]  ;;  %s2780_s16 = int_to_ptr.vmem [resolvable:$true] %s205_s16 }
  0x1f   : > { %p2776_p13 = pnand %p2180_p12, %p2743_p1 }
  0x21   : > { %p2435_p2 = pneg %p2776_p13 }
  0x24   : > { %s2433_s29 = scalar_lea.hbm %s3142_s1, 4096 }
  0x25   : > { %p2434_p0 = scmp.ne.s32.totalorder %s3142_s1, %s2433_s29  ;;  %p2440_p6 = scmp.lt.u32.totalorder %s2433_s29, %s3142_s1 }
  0x27   : > { %p2436_p4 = pnand %p2435_p2, %p2434_p0 }
  0x29   : > { %p2437_p5 = pneg %p2436_p4 }
  0x2b   : > { %p2442_p8 = pnand %p2440_p6, %p2437_p5 }
  0x2d   : > { %2445 = shalt.err (!%p2442_p8)
}
  0x2e   : > { %s2446_s15 = scalar_lea.vmem %s190_s13, 4096  ;;  %p2454_p7 = scmp.lt.s32.totalorder %s190_s13, %s190_s13 }
  0x2f   : > { %p2447_p10 = scmp.ne.s32.totalorder %s190_s13, %s2446_s15  ;;  %p2455_p1 = scmp.lt.s32.totalorder %s2446_s15, %s2446_s15 }
  0x31   : > { %p2449_p12 = pnand %p2447_p10, %p2435_p2  ;;  %p2456_p3 = por %p2455_p1, %p2454_p7 }
  0x33   : > { %p2450_p9 = pneg %p2449_p12 }
  0x35   : > { %p2457_p11 = pnand %p2456_p3, %p2450_p9 }
  0x37   : > { %2460 = shalt.err (!%p2457_p11)
}
  0x38   : > { %s2649_s17 = smov 64   ;;  %s2650_s21 = smov 4  }
  0x39   : > { %2183 = dma.hbm_to_vmem [thread:$0]  (!%p2776_p13), %s3142_s1, 4096, %s190_s13, [#allocation7], %s2649_s17, %s2649_s17, %s2650_s21  }
  0x3a   : > { %s3143_s3 = sld [smem:[#allocation18_spill]] }
  0x40   : > { %s2461_s12 = scalar_lea.hbm %s3143_s3, 1024 }
  0x41   : > { %p2462_p0 = scmp.ne.s32.totalorder %s3143_s3, %s2461_s12  ;;  %p2468_p7 = scmp.lt.u32.totalorder %s2461_s12, %s3143_s3 }
  0x43   : > { %p2464_p1 = pnand %p2462_p0, %p2435_p2 }
  0x45   : > { %p2465_p3 = pneg %p2464_p1 }
  0x47   : > { %p2470_p9 = pnand %p2468_p7, %p2465_p3 }
  0x49   : > { %2473 = shalt.err (!%p2470_p9)
}
  0x4a   : > { %s2474_s13 = scalar_lea.vmem %s2780_s16, 1024  ;;  %p2482_p6 = scmp.lt.s32.totalorder %s2780_s16, %s2780_s16 }
  0x4b   : > { %p2475_p11 = scmp.ne.s32.totalorder %s2780_s16, %s2474_s13  ;;  %p2483_p8 = scmp.lt.s32.totalorder %s2474_s13, %s2474_s13 }
  0x4d   : > { %p2477_p4 = pnand %p2475_p11, %p2435_p2  ;;  %p2484_p10 = por %p2483_p8, %p2482_p6 }
  0x4f   : > { %p2478_p5 = pneg %p2477_p4 }
  0x51   : > { %p2485_p12 = pnand %p2484_p10, %p2478_p5 }
  0x53   : > { %2488 = shalt.err (!%p2485_p12)
}
  0x54   : > { %2186 = dma.hbm_to_vmem [thread:$0]  (!%p2776_p13), %s3143_s3, 1024, %s2780_s16, [#allocation7], %s2649_s17, %s2649_s17, %s2650_s21  }
  0x55   : > { %s31_s9 = sadd.s32 1, %s2637_s26  ;;  %s34_s7 = sadd.s32 1, %s2641_s27 }
  0x56   : > { %p32_p2 = scmp.ge.s32.totalorder %s31_s9, 4  ;;  %s41_s14 = sadd.s32 1, %s2625_s23 }
  0x57   : > { %p48_p0 = scmp.ne.s32.totalorder %s2625_s23, %s2621_s22  ;;  %p49_p1 = scmp.eq.s32.totalorder %s2645_s28, 0 }
  0x58   : > { %s3167_s9 = smov (%p32_p2, %s31_s9), 0  ;;  %s3169_s7 = smov (!%p32_p2, %s34_s7), %s2641_s27 }
  0x59   : > { %s38_s10 = ssub.s32 %s2637_s26, %s3167_s9  ;;  %p2840_p3 = por %p49_p1, %p48_p0 }
  0x5a   : > { %p36_p13 = scmp.ge.s32.totalorder %s3169_s7, 2  ;;  %p39_p7 = scmp.eq.s32.totalorder %s38_s10, 0 }
  0x5b   : > { %s148_s16 = smul.u32 %s2637_s26, %s2641_s27  ;;  %p2197_p9 = scmp.lt.s32.totalorder %s2645_s28, 8 }
  0x5c   : > { %s3171_s7 = smov (%p36_p13, %s3169_s7), 0  ;;  %s222_s30 = sand.u32 1, %s2625_s23  }
  0x5d   : > { %s2850_s17 = scalar_select %p39_p7, %s2625_s23, %s41_s14  }
  0x5e   : > { %s149_s21 = smul.u32 %s3171_s7, %s3167_s9  ;;  %s1721_s12 = sshll.u32 %s222_s30, 8 }
  0x5f   : > { %s1846_s13 = sshll.u32 %s2637_s26, 12  ;;  %s226_s10 = scalar_lea.vmem [#allocation3], %s1721_s12 }
  0x60   : > { %s150_s15 = ssub.s32 %s148_s16, %s149_s21  ;;  %s2859_s1 = scalar_lea.hbm %s3112_s0, %s1846_s13 }
  0x61   : > { %p151_p11 = scmp.eq.s32.totalorder %s150_s15, 0  ;;  %s234_s3 = sshll.u32 %s226_s10, 4  ;;  %s2866_s3 = int_to_ptr.vmem [resolvable:$true] %s234_s3 }
  0x62   : > { %s3145_s27 = sadd.s32 1, %s2613_s20  ;;  %p2872_p4 = pnand %p2197_p9, %p2840_p3 }
  0x63   : > { %s2864_s14 = scalar_select %p151_p11, %s2613_s20, %s3145_s27  }
  0x64   : > { %s2876_s21 = scalar_lea.sflag [#allocation4], %s222_s30  ;;  %s2489_s15 = scalar_lea.hbm %s2859_s1, 4096 }
  0x65   : > { %p2490_p5 = scmp.ne.s32.totalorder %s2859_s1, %s2489_s15  ;;  %p2491_p6 = pneg %p2872_p4 }
  0x66   : > { %s2494_s29 = scalar_lea.hbm %s3112_s0, 16384  ;;  %p2495_p12 = scmp.lt.u32.totalorder %s2859_s1, %s3112_s0 }
  0x67   : > { %p2492_p8 = pnand %p2491_p6, %p2490_p5  ;;  %p2496_p2 = scmp.lt.u32.totalorder %s2494_s29, %s2489_s15 }
  0x68   : > { %p2498_p1 = scmp.lt.u32.totalorder %s2489_s15, %s2859_s1 }
  0x69   : > { %p2493_p10 = pneg %p2492_p8  ;;  %p2497_p0 = por %p2496_p2, %p2495_p12 }
  0x6b   : > { %p2499_p3 = por %p2498_p1, %p2497_p0 }
  0x6d   : > { %p2500_p13 = pnand %p2499_p3, %p2493_p10 }
  0x6f   : > { %2503 = shalt.err (!%p2500_p13)
}
  0x70   : > { %s2504_s30 = scalar_lea.vmem %s2866_s3, 4096  ;;  %s2651_s18 = smov [#allocation3]  }
  0x71   : > { %p2505_p7 = scmp.ne.s32.totalorder %s2866_s3, %s2504_s30  ;;  %s2509_s10 = sshll.u32 %s2651_s18, 4  ;;  %s2510_s10 = int_to_ptr.vmem [resolvable:$false] %s2509_s10 }
  0x72   : > { %s2511_s27 = scalar_lea.vmem %s2510_s10, 8192  ;;  %p2512_p5 = scmp.lt.s32.totalorder %s2866_s3, %s2510_s10 }
  0x73   : > { %p2507_p9 = pnand %p2505_p7, %p2491_p6  ;;  %p2513_p8 = scmp.lt.s32.totalorder %s2511_s27, %s2504_s30 }
  0x75   : > { %p2508_p11 = pneg %p2507_p9  ;;  %p2514_p12 = por %p2513_p8, %p2512_p5 }
  0x77   : > { %p2515_p2 = pnand %p2514_p12, %p2508_p11 }
  0x79   : > { %2518 = shalt.err (!%p2515_p2)
}
  0x7a   : > { %s2652_s15 = smov 256   ;;  %s2653_s12 = smov 16  }
  0x7b   : > { %2190 = dma.hbm_to_vmem [thread:$0]  (!%p2872_p4), %s2859_s1, 4096, %s2866_s3, %s2876_s21, %s2652_s15, %s2652_s15, %s2653_s12  }
  0x7c   : > { %p3147_p6 = scmp.ne.s32.totalorder %s3140_s11, 0 }
  0x7d   : > { %s248_s29 = sand.u32 (!%p3147_p6), 1, %s2621_s22   ;;  %p3148_p10 = scmp.ne.s32.totalorder (!%p3147_p6), %s3135_s8, 0 }
  0x7e   : > { %246 = sbr.rel (%p3147_p6) target bundleno = 1018 (0x3fa), region = 40  ;;  %s1726_s13 = sshll.u32 (!%p3147_p6), %s248_s29, 8 }
  0x7f   : > { %s249_s5 = scalar_lea.sflag (!%p3147_p6), [#allocation4], %s248_s29  ;;  %s2907_s30 = scalar_lea.vmem (!%p3147_p6), [#allocation3], %s1726_s13 }
  0x85   : > { %2592 = dma.done.wait (%p3148_p10), %s249_s5, 4096  }
  0x86   : > { %2594 = vsyncadd (%p3148_p10), %s249_s5, 4294963200  ;;  %p3149_p0 = scmp.ne.s32.totalorder %s3134_s6, 0 }
  0x88   : > { %2596 = dma.done.wait (%p3149_p0), [#allocation7], 5120  }
  0x89   : > { %2598 = vsyncadd (%p3149_p0), [#allocation7], 4294962176  ;;  %s284_s1 = sand.u32 1, %s2609_s19   ;;  %p1730_p4 = scmp.ne.s32.totalorder %s2633_s25, 0 }
  0x8a   : > { %s1729_s3 = sshll.u32 %s284_s1, 7  ;;  %v2297_v0 = vld [vmem:[#allocation6 + $0x40] sm:$0xff] (!%p1730_p4)   ;;  %v2301_v4 = vld [vmem:[#allocation6 + $0x48] sm:$0xff] (!%p1730_p4)   ;;  %v2305_v8 = vld [vmem:[#allocation6 + $0x50] sm:$0xff] (!%p1730_p4)   ;;  %s1796_s16 = sshll.u32 (!%p1730_p4), %s2629_s24, 7 }
  0x8b   : > { %s2920_s11 = scalar_lea.vmem [#allocation9], %s1729_s3  ;;  %294 = sbr.rel (%p1730_p4) target bundleno = 454 (0x1c6), region = 56  ;;  %v2298_v1 = vld [vmem:[#allocation6 + $0xc0] sm:$0xff] (!%p1730_p4)   ;;  %1848 = vmatprep.subr.bf16.mxu0 (!%p1730_p4), %v2297_v0  ;;  %v2302_v5 = vld [vmem:[#allocation6 + $0xc8] sm:$0xff] (!%p1730_p4)   ;;  %v2306_v9 = vld [vmem:[#allocation6 + $0xd0] sm:$0xff] (!%p1730_p4)  }
  0x8c   : > { %v2299_v2 = vld [vmem:[#allocation6] sm:$0xff] (!%p1730_p4)   ;;  %1912 = vmatprep.subr.bf16.mxu1 (!%p1730_p4), %v2298_v1  ;;  %v2303_v6 = vld [vmem:[#allocation6 + $0x8] sm:$0xff] (!%p1730_p4)   ;;  %v2307_v10 = vld [vmem:[#allocation6 + $0x10] sm:$0xff] (!%p1730_p4)   ;;  %s969_s21 = sshra.s32 (!%p1730_p4), %s1796_s16, 4 }
  0x8d   : > { %v2300_v3 = vld [vmem:[#allocation6 + $0x80] sm:$0xff] (!%p1730_p4)   ;;  %1849 = vmatpush3.bf16.msra.mxu0 (!%p1730_p4), %v2299_v2  ;;  %v2304_v7 = vld [vmem:[#allocation6 + $0x88] sm:$0xff] (!%p1730_p4)   ;;  %v2308_v11 = vld [vmem:[#allocation6 + $0x90] sm:$0xff] (!%p1730_p4)   ;;  %s1797_s18 = sshll.u32 (!%p1730_p4), %s969_s21, 3 }
  0x8e   : > { %1913 = vmatpush3.bf16.msra.mxu1 (!%p1730_p4), %v2300_v3  ;;  %1850 = vmatprep.subr.bf16.mxu0 (!%p1730_p4), %v2301_v4  ;;  %v2309_v12 = vld [vmem:[#allocation6 + $0x58] sm:$0xff] (!%p1730_p4)   ;;  %v2313_v16 = vld [vmem:[#allocation6 + $0x60] sm:$0xff] (!%p1730_p4)   ;;  %v2317_v20 = vld [vmem:[#allocation6 + $0x68] sm:$0xff] (!%p1730_p4)   ;;  %s2964_s10 = scalar_lea.vmem (!%p1730_p4), [#allocation2], %s1797_s18 }
  0x8f   : > { %1914 = vmatprep.subr.bf16.mxu1 (!%p1730_p4), %v2302_v5  ;;  %v2310_v13 = vld [vmem:[#allocation6 + $0xd8] sm:$0xff] (!%p1730_p4)   ;;  %v2314_v17 = vld [vmem:[#allocation6 + $0xe0] sm:$0xff] (!%p1730_p4)   ;;  %v2318_v21 = vld [vmem:[#allocation6 + $0xe8] sm:$0xff] (!%p1730_p4)  }
  0x90   : > { %v2311_v14 = vld [vmem:[#allocation6 + $0x18] sm:$0xff] (!%p1730_p4)   ;;  %v2315_v18 = vld [vmem:[#allocation6 + $0x20] sm:$0xff] (!%p1730_p4)   ;;  %v2319_v22 = vld [vmem:[#allocation6 + $0x28] sm:$0xff] (!%p1730_p4)  }
  0x91   : > { %1851 = vmatpush3.bf16.msra.mxu0 (!%p1730_p4), %v2303_v6  ;;  %v2312_v15 = vld [vmem:[#allocation6 + $0x98] sm:$0xff] (!%p1730_p4)   ;;  %v2316_v19 = vld [vmem:[#allocation6 + $0xa0] sm:$0xff] (!%p1730_p4)   ;;  %v2320_v23 = vld [vmem:[#allocation6 + $0xa8] sm:$0xff] (!%p1730_p4)  }
  0x92   : > { %1915 = vmatpush3.bf16.msra.mxu1 %v2304_v7  ;;  %1852 = vmatprep.subr.bf16.mxu0 %v2305_v8  ;;  %v2321_v24 = vld [vmem:[#allocation6 + $0x70] sm:$0xff]   ;;  %v2325_v28 = vld [vmem:[#allocation6 + $0x78] sm:$0xff]   ;;  %v2958_v2 = vld [vmem:[%s3114_s2] ss:$0 sm:$0xff] }
  0x93   : > { %1916 = vmatprep.subr.bf16.mxu1 %v2306_v9  ;;  %v2322_v25 = vld [vmem:[#allocation6 + $0xf0] sm:$0xff]   ;;  %v2326_v29 = vld [vmem:[#allocation6 + $0xf8] sm:$0xff]  }
  0x94   : > { %v2323_v26 = vld [vmem:[#allocation6 + $0x30] sm:$0xff]   ;;  %v2327_v30 = vld [vmem:[#allocation6 + $0x38] sm:$0xff]  }
  0x95   : > { %1853 = vmatpush3.bf16.msra.mxu0 %v2307_v10  ;;  %v2324_v27 = vld [vmem:[#allocation6 + $0xb0] sm:$0xff]   ;;  %v2328_v31 = vld [vmem:[#allocation6 + $0xb8] sm:$0xff]  }
  0x96   : > { %1917 = vmatpush3.bf16.msra.mxu1 %v2308_v11  ;;  %1854 = vmatprep.subr.bf16.mxu0 %v2309_v12  ;;  %v2329_v32 = vld [vmem:[%s2907_s30] ss:$16 sps:$4 sm:$0xff]   ;;  %v2331_v33 = vld [vmem:[%s2907_s30 + $0x4] ss:$16 sps:$4 sm:$0xff]   ;;  %v2332_v34 = vld [vmem:[%s2907_s30 + $0x8] ss:$16 sps:$4 sm:$0xff]  }
  0x97   : > { %1918 = vmatprep.subr.bf16.mxu1 %v2310_v13  ;;  %v2334_v35 = vld [vmem:[%s2907_s30 + $0xc] ss:$16 sps:$4 sm:$0xff]   ;;  %782 = vmatprep.mubr.bf16.mxu0 %v2331_v33  ;;  %v2335_v36 = vld [vmem:[%s2907_s30 + $0x24] ss:$16 sps:$4 sm:$0xff]   ;;  %v2339_v38 = vld [vmem:[%s2907_s30 + $0x20] ss:$16 sps:$4 sm:$0xff]  }
  0x98   : > { %879 = vmatprep.mubr.bf16.mxu1 %v2334_v35  ;;  %v2337_v37 = vld [vmem:[%s2907_s30 + $0x2c] ss:$16 sps:$4 sm:$0xff]   ;;  %v2340_v39 = vld [vmem:[%s2907_s30 + $0x28] ss:$16 sps:$4 sm:$0xff]   ;;  %v2341_v40 = vld [vmem:[%s2907_s30 + $0x44] ss:$16 sps:$4 sm:$0xff]  }
  0x99   : > { %1855 = vmatpush3.bf16.msra.mxu0 %v2311_v14  ;;  %v2343_v41 = vld [vmem:[%s2907_s30 + $0x4c] ss:$16 sps:$4 sm:$0xff]   ;;  %v2345_v42 = vld [vmem:[%s2907_s30 + $0x40] ss:$16 sps:$4 sm:$0xff]   ;;  %v2346_v43 = vld [vmem:[%s2907_s30 + $0x48] ss:$16 sps:$4 sm:$0xff]  }
  0x9a   : > { %1919 = vmatpush3.bf16.msra.mxu1 %v2312_v15  ;;  %1856 = vmatprep.subr.bf16.mxu0 %v2313_v16  ;;  %v2347_v44 = vld [vmem:[%s2907_s30 + $0x64] ss:$16 sps:$4 sm:$0xff]   ;;  %v2349_v45 = vld [vmem:[%s2907_s30 + $0x6c] ss:$16 sps:$4 sm:$0xff]   ;;  %v2351_v46 = vld [vmem:[%s2907_s30 + $0x60] ss:$16 sps:$4 sm:$0xff]  }
  0x9b   : > { %1920 = vmatprep.subr.bf16.mxu1 %v2314_v17  ;;  %v2352_v47 = vld [vmem:[%s2907_s30 + $0x68] ss:$16 sps:$4 sm:$0xff]   ;;  %v2353_v48 = vld [vmem:[%s2907_s30 + $0x84] ss:$16 sps:$4 sm:$0xff]   ;;  %v2355_v49 = vld [vmem:[%s2907_s30 + $0x8c] ss:$16 sps:$4 sm:$0xff]  }
  0x9c   : > { %v2357_v50 = vld [vmem:[%s2907_s30 + $0x80] ss:$16 sps:$4 sm:$0xff]   ;;  %v2358_v51 = vld [vmem:[%s2907_s30 + $0x88] ss:$16 sps:$4 sm:$0xff]   ;;  %v2359_v52 = vld [vmem:[%s2907_s30 + $0xa4] ss:$16 sps:$4 sm:$0xff]  }
  0x9d   : > { %1857 = vmatpush3.bf16.msra.mxu0 %v2315_v18  ;;  %v2361_v53 = vld [vmem:[%s2907_s30 + $0xac] ss:$16 sps:$4 sm:$0xff]   ;;  %v2363_v54 = vld [vmem:[%s2907_s30 + $0xa0] ss:$16 sps:$4 sm:$0xff]   ;;  %v2364_v55 = vld [vmem:[%s2907_s30 + $0xa8] ss:$16 sps:$4 sm:$0xff]  }
  0x9e   : > { %1921 = vmatpush3.bf16.msra.mxu1 %v2316_v19  ;;  %1858 = vmatprep.subr.bf16.mxu0 %v2317_v20  ;;  %v2365_v56 = vld [vmem:[%s2907_s30 + $0xc4] ss:$16 sps:$4 sm:$0xff]   ;;  %v2367_v57 = vld [vmem:[%s2907_s30 + $0xcc] ss:$16 sps:$4 sm:$0xff]   ;;  %v2369_v58 = vld [vmem:[%s2907_s30 + $0xc0] ss:$16 sps:$4 sm:$0xff]  }
  0x9f   : > { %1922 = vmatprep.subr.bf16.mxu1 %v2318_v21  ;;  %v2370_v59 = vld [vmem:[%s2907_s30 + $0xc8] ss:$16 sps:$4 sm:$0xff]   ;;  %v2371_v60 = vld [vmem:[%s2907_s30 + $0xe4] ss:$16 sps:$4 sm:$0xff]   ;;  %v2373_v61 = vld [vmem:[%s2907_s30 + $0xec] ss:$16 sps:$4 sm:$0xff]  }
  0xa0   : > { %v2375_v62 = vld [vmem:[%s2907_s30 + $0xe0] ss:$16 sps:$4 sm:$0xff]   ;;  %v2376_v63 = vld [vmem:[%s2907_s30 + $0xe8] ss:$16 sps:$4 sm:$0xff]  }
  0xa1   : > { %1859 = vmatpush3.bf16.msra.mxu0 %v2319_v22 }
  0xa2   : > { %1923 = vmatpush3.bf16.msra.mxu1 %v2320_v23  ;;  %1860 = vmatprep.subr.bf16.mxu0 %v2321_v24 }
  0xa3   : > { %1924 = vmatprep.subr.bf16.mxu1 %v2322_v25 }
  0xa5   : > { %1861 = vmatpush3.bf16.msra.mxu0 %v2323_v26 }
  0xa6   : > { %1925 = vmatpush3.bf16.msra.mxu1 %v2324_v27  ;;  %1862 = vmatprep.subr.bf16.mxu0 %v2325_v28 }
  0xa7   : > { %1926 = vmatprep.subr.bf16.mxu1 %v2326_v29 }
  0xa9   : > { %1863 = vmatpush3.bf16.msra.mxu0 %v2327_v30 }
  0xaa   : > { %1927 = vmatpush3.bf16.msra.mxu1 %v2328_v31 }
  0xac   : > { %783 = vmatmul.mubr.bf16.vlgmr.msra.gmra.mrb[0].mxu0 %v2329_v32 }
  0xad   : > { %880 = vmatmul.mubr.bf16.vlgmr.msra.gmra.mrb[0].mxu1 %v2332_v34  ;;  %790 = vmatprep.mubr.bf16.mxu0 %v2335_v36 }
  0xae   : > { %887 = vmatprep.mubr.bf16.mxu1 %v2337_v37 }
  0xb4   : > { %791 = vmatmul.mubr.bf16.gmra.mrb[4].mxu0 %v2339_v38 }
  0xb5   : > { %888 = vmatmul.mubr.bf16.gmra.mrb[4].mxu1 %v2340_v39  ;;  %798 = vmatprep.mubr.bf16.mxu0 %v2341_v40 }
  0xb6   : > { %895 = vmatprep.mubr.bf16.mxu1 %v2343_v41 }
  0xbc   : > { %799 = vmatmul.mubr.bf16.gmra.mrb[8].mxu0 %v2345_v42 }
  0xbd   : > { %896 = vmatmul.mubr.bf16.gmra.mrb[8].mxu1 %v2346_v43  ;;  %806 = vmatprep.mubr.bf16.mxu0 %v2347_v44 }
  0xbe   : > { %903 = vmatprep.mubr.bf16.mxu1 %v2349_v45 }
  0xc4   : > { %807 = vmatmul.mubr.bf16.gmra.mrb[12].mxu0 %v2351_v46 }
  0xc5   : > { %904 = vmatmul.mubr.bf16.gmra.mrb[12].mxu1 %v2352_v47  ;;  %814 = vmatprep.mubr.bf16.mxu0 %v2353_v48 }
  0xc6   : > { %911 = vmatprep.mubr.bf16.mxu1 %v2355_v49 }
  0xcc   : > { %815 = vmatmul.mubr.bf16.gmra.mrb[16].mxu0 %v2357_v50 }
  0xcd   : > { %912 = vmatmul.mubr.bf16.gmra.mrb[16].mxu1 %v2358_v51  ;;  %822 = vmatprep.mubr.bf16.mxu0 %v2359_v52 }
  0xce   : > { %919 = vmatprep.mubr.bf16.mxu1 %v2361_v53 }
  0xd4   : > { %823 = vmatmul.mubr.bf16.gmra.mrb[20].mxu0 %v2363_v54 }
  0xd5   : > { %920 = vmatmul.mubr.bf16.gmra.mrb[20].mxu1 %v2364_v55  ;;  %830 = vmatprep.mubr.bf16.mxu0 %v2365_v56 }
  0xd6   : > { %927 = vmatprep.mubr.bf16.mxu1 %v2367_v57 }
  0xdc   : > { %831 = vmatmul.mubr.bf16.gmra.mrb[24].mxu0 %v2369_v58 }
  0xdd   : > { %928 = vmatmul.mubr.bf16.gmra.mrb[24].mxu1 %v2370_v59  ;;  %838 = vmatprep.mubr.bf16.mxu0 %v2371_v60 }
  0xde   : > { %935 = vmatprep.mubr.bf16.mxu1 %v2373_v61 }
  0xe4   : > { %839 = vmatmul.mubr.bf16.gmra.mrb[28].mxu0 %v2375_v62 }
  0xe5   : > { %936 = vmatmul.mubr.bf16.gmra.mrb[28].mxu1 %v2376_v63 }
 0x17f   : > { %v1864_v0 = vpop.f32.mrb[0].mxu0 }
 0x180   : > { %v1928_v1 = vpop.f32.mrb[0].mxu1  ;;  %v1865_v3 = vpop.f32.mrb[1].mxu0 }
 0x181   : > { %v1866_v4 = vadd.f32 %v1865_v3, %v1864_v0  ;;  %v1929_v5 = vpop.f32.mrb[1].mxu1  ;;  %v1867_v6 = vpop.f32.mrb[2].mxu0 }
 0x182   : > { %v1930_v7 = vadd.f32 %v1929_v5, %v1928_v1  ;;  %v1931_v8 = vpop.f32.mrb[2].mxu1  ;;  %v1868_v9 = vpop.f32.mrb[3].mxu0 }
 0x183   : > { %v785_v10 = vadd.f32 %v1866_v4, %v2958_v2  ;;  %v1869_v11 = vadd.f32 %v1868_v9, %v1867_v6  ;;  %v1932_v12 = vpop.f32.mrb[3].mxu1 }
 0x184   : > { %v1933_v13 = vadd.f32 %v1932_v12, %v1931_v8 }
 0x185   : > { %v882_v14 = vadd.f32 %v1930_v7, %v785_v10  ;;  %v788_v15 = vadd.f32 %v1869_v11, %v2958_v2 }
 0x187   : > { %v885_v16 = vadd.f32 %v1933_v13, %v788_v15  ;;  %v1870_v17 = vpop.f32.mrb[4].mxu0  ;;  %v944_v20 = vmax.f32 %v882_v14, 0.0 }
 0x188   : > { %v1934_v18 = vpop.f32.mrb[4].mxu1  ;;  %v1871_v19 = vpop.f32.mrb[5].mxu0 }
 0x189   : > { %v945_v21 = vmax.f32 %v885_v16, 0.0  ;;  %v1872_v22 = vadd.f32 %v1871_v19, %v1870_v17  ;;  %v1935_v23 = vpop.f32.mrb[5].mxu1  ;;  %v1873_v24 = vpop.f32.mrb[6].mxu0 }
 0x18a   : > { %v1936_v25 = vadd.f32 %v1935_v23, %v1934_v18  ;;  %v1937_v26 = vpop.f32.mrb[6].mxu1  ;;  %v1874_v27 = vpop.f32.mrb[7].mxu0 }
 0x18b   : > { %v961_v28 = vpack.c.bf16 %v945_v21, %v944_v20  ;;  %v793_v29 = vadd.f32 %v1872_v22, %v2958_v2  ;;  %v1875_v30 = vadd.f32 %v1874_v27, %v1873_v24  ;;  %v1938_v31 = vpop.f32.mrb[7].mxu1 }
 0x18c   : > { %v1939_v32 = vadd.f32 %v1938_v31, %v1937_v26 }
 0x18d   : > { %973 = vst [vmem:[%s2964_s10] sm:$0xff] %v961_v28  ;;  %v890_v33 = vadd.f32 %v1936_v25, %v793_v29  ;;  %v796_v34 = vadd.f32 %v1875_v30, %v2958_v2 }
 0x18f   : > { %v893_v35 = vadd.f32 %v1939_v32, %v796_v34  ;;  %v1876_v36 = vpop.f32.mrb[8].mxu0  ;;  %v946_v39 = vmax.f32 %v890_v33, 0.0 }
 0x190   : > { %v1940_v37 = vpop.f32.mrb[8].mxu1  ;;  %v1877_v38 = vpop.f32.mrb[9].mxu0 }
 0x191   : > { %v947_v40 = vmax.f32 %v893_v35, 0.0  ;;  %v1878_v41 = vadd.f32 %v1877_v38, %v1876_v36  ;;  %v1941_v42 = vpop.f32.mrb[9].mxu1  ;;  %v1879_v43 = vpop.f32.mrb[10].mxu0 }
 0x192   : > { %v1942_v44 = vadd.f32 %v1941_v42, %v1940_v37  ;;  %v1943_v45 = vpop.f32.mrb[10].mxu1  ;;  %v1880_v46 = vpop.f32.mrb[11].mxu0 }
 0x193   : > { %v962_v47 = vpack.c.bf16 %v947_v40, %v946_v39  ;;  %v801_v48 = vadd.f32 %v1878_v41, %v2958_v2  ;;  %v1881_v49 = vadd.f32 %v1880_v46, %v1879_v43  ;;  %v1944_v50 = vpop.f32.mrb[11].mxu1 }
 0x194   : > { %v1945_v51 = vadd.f32 %v1944_v50, %v1943_v45 }
 0x195   : > { %974 = vst [vmem:[%s2964_s10 + $0x8] sm:$0xff] %v962_v47  ;;  %v898_v52 = vadd.f32 %v1942_v44, %v801_v48  ;;  %v804_v53 = vadd.f32 %v1881_v49, %v2958_v2 }
 0x197   : > { %v901_v54 = vadd.f32 %v1945_v51, %v804_v53  ;;  %v1882_v55 = vpop.f32.mrb[12].mxu0  ;;  %v948_v58 = vmax.f32 %v898_v52, 0.0 }
 0x198   : > { %v1946_v56 = vpop.f32.mrb[12].mxu1  ;;  %v1883_v57 = vpop.f32.mrb[13].mxu0 }
 0x199   : > { %v949_v59 = vmax.f32 %v901_v54, 0.0  ;;  %v1884_v60 = vadd.f32 %v1883_v57, %v1882_v55  ;;  %v1947_v61 = vpop.f32.mrb[13].mxu1  ;;  %v1885_v62 = vpop.f32.mrb[14].mxu0 }
 0x19a   : > { %v1948_v63 = vadd.f32 %v1947_v61, %v1946_v56  ;;  %v1949_v0 = vpop.f32.mrb[14].mxu1  ;;  %v1886_v1 = vpop.f32.mrb[15].mxu0 }
 0x19b   : > { %v963_v3 = vpack.c.bf16 %v949_v59, %v948_v58  ;;  %v809_v4 = vadd.f32 %v1884_v60, %v2958_v2  ;;  %v1887_v5 = vadd.f32 %v1886_v1, %v1885_v62  ;;  %v1950_v6 = vpop.f32.mrb[15].mxu1 }
 0x19c   : > { %v1951_v7 = vadd.f32 %v1950_v6, %v1949_v0 }
 0x19d   : > { %975 = vst [vmem:[%s2964_s10 + $0x10] sm:$0xff] %v963_v3  ;;  %v906_v8 = vadd.f32 %v1948_v63, %v809_v4  ;;  %v812_v9 = vadd.f32 %v1887_v5, %v2958_v2 }
 0x19f   : > { %v909_v10 = vadd.f32 %v1951_v7, %v812_v9  ;;  %v1888_v11 = vpop.f32.mrb[16].mxu0  ;;  %v950_v14 = vmax.f32 %v906_v8, 0.0 }
 0x1a0   : > { %v1952_v12 = vpop.f32.mrb[16].mxu1  ;;  %v1889_v13 = vpop.f32.mrb[17].mxu0 }
 0x1a1   : > { %v951_v15 = vmax.f32 %v909_v10, 0.0  ;;  %v1890_v16 = vadd.f32 %v1889_v13, %v1888_v11  ;;  %v1953_v17 = vpop.f32.mrb[17].mxu1  ;;  %v1891_v18 = vpop.f32.mrb[18].mxu0 }
 0x1a2   : > { %v1954_v19 = vadd.f32 %v1953_v17, %v1952_v12  ;;  %v1955_v20 = vpop.f32.mrb[18].mxu1  ;;  %v1892_v21 = vpop.f32.mrb[19].mxu0 }
 0x1a3   : > { %v964_v22 = vpack.c.bf16 %v951_v15, %v950_v14  ;;  %v817_v23 = vadd.f32 %v1890_v16, %v2958_v2  ;;  %v1893_v24 = vadd.f32 %v1892_v21, %v1891_v18  ;;  %v1956_v25 = vpop.f32.mrb[19].mxu1 }
 0x1a4   : > { %v1957_v26 = vadd.f32 %v1956_v25, %v1955_v20 }
 0x1a5   : > { %976 = vst [vmem:[%s2964_s10 + $0x18] sm:$0xff] %v964_v22  ;;  %v914_v27 = vadd.f32 %v1954_v19, %v817_v23  ;;  %v820_v28 = vadd.f32 %v1893_v24, %v2958_v2 }
 0x1a7   : > { %v917_v29 = vadd.f32 %v1957_v26, %v820_v28  ;;  %v1894_v30 = vpop.f32.mrb[20].mxu0  ;;  %v952_v33 = vmax.f32 %v914_v27, 0.0 }
 0x1a8   : > { %v1958_v31 = vpop.f32.mrb[20].mxu1  ;;  %v1895_v32 = vpop.f32.mrb[21].mxu0 }
 0x1a9   : > { %v953_v34 = vmax.f32 %v917_v29, 0.0  ;;  %v1896_v35 = vadd.f32 %v1895_v32, %v1894_v30  ;;  %v1959_v36 = vpop.f32.mrb[21].mxu1  ;;  %v1897_v37 = vpop.f32.mrb[22].mxu0 }
 0x1aa   : > { %v1960_v38 = vadd.f32 %v1959_v36, %v1958_v31  ;;  %v1961_v39 = vpop.f32.mrb[22].mxu1  ;;  %v1898_v40 = vpop.f32.mrb[23].mxu0 }
 0x1ab   : > { %v965_v41 = vpack.c.bf16 %v953_v34, %v952_v33  ;;  %v825_v42 = vadd.f32 %v1896_v35, %v2958_v2  ;;  %v1899_v43 = vadd.f32 %v1898_v40, %v1897_v37  ;;  %v1962_v44 = vpop.f32.mrb[23].mxu1 }
 0x1ac   : > { %v1963_v45 = vadd.f32 %v1962_v44, %v1961_v39 }
 0x1ad   : > { %977 = vst [vmem:[%s2964_s10 + $0x20] sm:$0xff] %v965_v41  ;;  %v922_v46 = vadd.f32 %v1960_v38, %v825_v42  ;;  %v828_v47 = vadd.f32 %v1899_v43, %v2958_v2 }
 0x1af   : > { %v925_v48 = vadd.f32 %v1963_v45, %v828_v47  ;;  %v1900_v49 = vpop.f32.mrb[24].mxu0  ;;  %v954_v52 = vmax.f32 %v922_v46, 0.0 }
 0x1b0   : > { %v1964_v50 = vpop.f32.mrb[24].mxu1  ;;  %v1901_v51 = vpop.f32.mrb[25].mxu0 }
 0x1b1   : > { %v955_v53 = vmax.f32 %v925_v48, 0.0  ;;  %v1902_v54 = vadd.f32 %v1901_v51, %v1900_v49  ;;  %v1965_v55 = vpop.f32.mrb[25].mxu1  ;;  %v1903_v56 = vpop.f32.mrb[26].mxu0 }
 0x1b2   : > { %v1966_v57 = vadd.f32 %v1965_v55, %v1964_v50  ;;  %v1967_v58 = vpop.f32.mrb[26].mxu1  ;;  %v1904_v59 = vpop.f32.mrb[27].mxu0 }
 0x1b3   : > { %v966_v60 = vpack.c.bf16 %v955_v53, %v954_v52  ;;  %v833_v61 = vadd.f32 %v1902_v54, %v2958_v2  ;;  %v1905_v62 = vadd.f32 %v1904_v59, %v1903_v56  ;;  %v1968_v63 = vpop.f32.mrb[27].mxu1 }
 0x1b4   : > { %v1969_v0 = vadd.f32 %v1968_v63, %v1967_v58 }
 0x1b5   : > { %978 = vst [vmem:[%s2964_s10 + $0x28] sm:$0xff] %v966_v60  ;;  %v930_v1 = vadd.f32 %v1966_v57, %v833_v61  ;;  %v836_v3 = vadd.f32 %v1905_v62, %v2958_v2 }
 0x1b7   : > { %v933_v4 = vadd.f32 %v1969_v0, %v836_v3  ;;  %v1906_v5 = vpop.f32.mrb[28].mxu0  ;;  %v956_v8 = vmax.f32 %v930_v1, 0.0 }
 0x1b8   : > { %v1970_v6 = vpop.f32.mrb[28].mxu1  ;;  %v1907_v7 = vpop.f32.mrb[29].mxu0 }
 0x1b9   : > { %v957_v9 = vmax.f32 %v933_v4, 0.0  ;;  %v1908_v10 = vadd.f32 %v1907_v7, %v1906_v5  ;;  %v1971_v11 = vpop.f32.mrb[29].mxu1  ;;  %v1909_v12 = vpop.f32.mrb[30].mxu0 }
 0x1ba   : > { %v1972_v13 = vadd.f32 %v1971_v11, %v1970_v6  ;;  %v1973_v14 = vpop.f32.mrb[30].mxu1  ;;  %v1910_v15 = vpop.f32.mrb[31].mxu0 }
 0x1bb   : > { %v967_v16 = vpack.c.bf16 %v957_v9, %v956_v8  ;;  %v841_v17 = vadd.f32 %v1908_v10, %v2958_v2  ;;  %v1911_v18 = vadd.f32 %v1910_v15, %v1909_v12  ;;  %v1974_v19 = vpop.f32.mrb[31].mxu1 }
 0x1bc   : > { %v1975_v20 = vadd.f32 %v1974_v19, %v1973_v14 }
 0x1bd   : > { %979 = vst [vmem:[%s2964_s10 + $0x30] sm:$0xff] %v967_v16  ;;  %v938_v21 = vadd.f32 %v1972_v13, %v841_v17  ;;  %v844_v22 = vadd.f32 %v1911_v18, %v2958_v2 }
 0x1bf   : > { %v941_v23 = vadd.f32 %v1975_v20, %v844_v22  ;;  %v958_v24 = vmax.f32 %v938_v21, 0.0 }
 0x1c1   : > { %v959_v25 = vmax.f32 %v941_v23, 0.0 }
 0x1c3   : > { %v968_v26 = vpack.c.bf16 %v959_v25, %v958_v24 }
 0x1c5   : > { %980 = vst [vmem:[%s2964_s10 + $0x38] sm:$0xff] %v968_v26 }
 0x1c6 PF: > { %p1798_p1 = scmp.ne.s32.totalorder %s2633_s25, 1 }
 0x1c7   : > { %v2379_v43 = vld [vmem:[%s2907_s30 + $0x4] ss:$16 sps:$4 sm:$0xff] (!%p1798_p1)   ;;  %v2382_v45 = vld [vmem:[%s2907_s30 + $0xc] ss:$16 sps:$4 sm:$0xff] (!%p1798_p1)   ;;  %v2377_v60 = vld [vmem:[%s2907_s30] ss:$16 sps:$4 sm:$0xff] (!%p1798_p1)  }
 0x1c8   : > { %984 = sbr.rel (%p1798_p1) target bundleno = 990 (0x3de), region = 60  ;;  %1241 = vmatprep.mubr.bf16.mxu0 (!%p1798_p1), %v2379_v43  ;;  %1338 = vmatprep.mubr.bf16.mxu1 (!%p1798_p1), %v2382_v45  ;;  %v2380_v61 = vld [vmem:[%s2907_s30 + $0x8] ss:$16 sps:$4 sm:$0xff] (!%p1798_p1)   ;;  %v2383_v62 = vld [vmem:[%s2907_s30 + $0x24] ss:$16 sps:$4 sm:$0xff] (!%p1798_p1)  }
 0x1c9   : > { %v2385_v63 = vld [vmem:[%s2907_s30 + $0x2c] ss:$16 sps:$4 sm:$0xff] (!%p1798_p1)   ;;  %v2425_v0 = vld [vmem:[#allocation8] sm:$0xff] (!%p1798_p1)   ;;  %v2388_v4 = vld [vmem:[%s2907_s30 + $0x28] ss:$16 sps:$4 sm:$0xff] (!%p1798_p1)  }
 0x1ca   : > { %v2426_v1 = vld [vmem:[#allocation8 + $0x8] sm:$0xff] (!%p1798_p1)   ;;  %v2387_v3 = vld [vmem:[%s2907_s30 + $0x20] ss:$16 sps:$4 sm:$0xff] (!%p1798_p1)   ;;  %v2389_v5 = vld [vmem:[%s2907_s30 + $0x44] ss:$16 sps:$4 sm:$0xff] (!%p1798_p1)  }
 0x1cb   : > { %v2391_v6 = vld [vmem:[%s2907_s30 + $0x4c] ss:$16 sps:$4 sm:$0xff] (!%p1798_p1)   ;;  %v2427_v7 = vld [vmem:[#allocation8 + $0x10] sm:$0xff] (!%p1798_p1)   ;;  %v2394_v10 = vld [vmem:[%s2907_s30 + $0x48] ss:$16 sps:$4 sm:$0xff] (!%p1798_p1)  }
 0x1cc   : > { %v1025_v27 = vld [vmem:[#allocation2 + $0x40] sm:$0xff] (!%p1798_p1)  ;;  %v1026_v31 = vld [vmem:[#allocation2 + $0x48] sm:$0xff] (!%p1798_p1)  ;;  %v1027_v34 = vld [vmem:[#allocation2 + $0x50] sm:$0xff] (!%p1798_p1) }
 0x1cd   : > { %v1041_v28 = vld [vmem:[#allocation2 + $0xc0] sm:$0xff] (!%p1798_p1)  ;;  %1976 = vmatprep.subr.bf16.mxu0 (!%p1798_p1), %v1025_v27  ;;  %v1042_v32 = vld [vmem:[#allocation2 + $0xc8] sm:$0xff] (!%p1798_p1)  ;;  %v1043_v35 = vld [vmem:[#allocation2 + $0xd0] sm:$0xff] (!%p1798_p1) }
 0x1ce   : > { %v1017_v29 = vld [vmem:[#allocation2] sm:$0xff] (!%p1798_p1)  ;;  %2040 = vmatprep.subr.bf16.mxu1 (!%p1798_p1), %v1041_v28  ;;  %v1018_v2 = vld [vmem:[#allocation2 + $0x8] sm:$0xff] (!%p1798_p1)  ;;  %v1019_v36 = vld [vmem:[#allocation2 + $0x10] sm:$0xff] (!%p1798_p1) }
 0x1cf   : > { %v1033_v30 = vld [vmem:[#allocation2 + $0x80] sm:$0xff]  ;;  %1977 = vmatpush3.bf16.msra.mxu0 %v1017_v29  ;;  %v1034_v33 = vld [vmem:[#allocation2 + $0x88] sm:$0xff]  ;;  %v1035_v37 = vld [vmem:[#allocation2 + $0x90] sm:$0xff] }
 0x1d0   : > { %2041 = vmatpush3.bf16.msra.mxu1 %v1033_v30  ;;  %1978 = vmatprep.subr.bf16.mxu0 %v1026_v31  ;;  %v1028_v38 = vld [vmem:[#allocation2 + $0x58] sm:$0xff]  ;;  %v1029_v42 = vld [vmem:[#allocation2 + $0x60] sm:$0xff]  ;;  %v1030_v48 = vld [vmem:[#allocation2 + $0x68] sm:$0xff] }
 0x1d1   : > { %2042 = vmatprep.subr.bf16.mxu1 %v1042_v32  ;;  %v1044_v39 = vld [vmem:[#allocation2 + $0xd8] sm:$0xff]  ;;  %v1045_v44 = vld [vmem:[#allocation2 + $0xe0] sm:$0xff]  ;;  %v1046_v49 = vld [vmem:[#allocation2 + $0xe8] sm:$0xff] }
 0x1d2   : > { %v1020_v40 = vld [vmem:[#allocation2 + $0x18] sm:$0xff]  ;;  %v1021_v46 = vld [vmem:[#allocation2 + $0x20] sm:$0xff]  ;;  %v1022_v50 = vld [vmem:[#allocation2 + $0x28] sm:$0xff] }
 0x1d3   : > { %1979 = vmatpush3.bf16.msra.mxu0 %v1018_v2  ;;  %v1036_v41 = vld [vmem:[#allocation2 + $0x98] sm:$0xff]  ;;  %v1037_v47 = vld [vmem:[#allocation2 + $0xa0] sm:$0xff]  ;;  %v1038_v51 = vld [vmem:[#allocation2 + $0xa8] sm:$0xff] }
 0x1d4   : > { %2043 = vmatpush3.bf16.msra.mxu1 %v1034_v33  ;;  %1980 = vmatprep.subr.bf16.mxu0 %v1027_v34  ;;  %v1031_v52 = vld [vmem:[#allocation2 + $0x70] sm:$0xff]  ;;  %v1032_v56 = vld [vmem:[#allocation2 + $0x78] sm:$0xff]  ;;  %v2429_v31 = vld [vmem:[#allocation8 + $0x20] sm:$0xff]  }
 0x1d5   : > { %2044 = vmatprep.subr.bf16.mxu1 %v1043_v35  ;;  %v1047_v53 = vld [vmem:[#allocation2 + $0xf0] sm:$0xff]  ;;  %v1048_v57 = vld [vmem:[#allocation2 + $0xf8] sm:$0xff]  ;;  %v2430_v32 = vld [vmem:[#allocation8 + $0x28] sm:$0xff]  }
 0x1d6   : > { %v1023_v54 = vld [vmem:[#allocation2 + $0x30] sm:$0xff]  ;;  %v1024_v58 = vld [vmem:[#allocation2 + $0x38] sm:$0xff] }
 0x1d7   : > { %1981 = vmatpush3.bf16.msra.mxu0 %v1019_v36  ;;  %v1039_v55 = vld [vmem:[#allocation2 + $0xb0] sm:$0xff]  ;;  %v1040_v59 = vld [vmem:[#allocation2 + $0xb8] sm:$0xff] }
 0x1d8   : > { %2045 = vmatpush3.bf16.msra.mxu1 %v1035_v37  ;;  %1982 = vmatprep.subr.bf16.mxu0 %v1028_v38  ;;  %v2428_v8 = vld [vmem:[#allocation8 + $0x18] sm:$0xff]   ;;  %v2393_v9 = vld [vmem:[%s2907_s30 + $0x40] ss:$16 sps:$4 sm:$0xff]   ;;  %v2395_v11 = vld [vmem:[%s2907_s30 + $0x64] ss:$16 sps:$4 sm:$0xff]  }
 0x1d9   : > { %2046 = vmatprep.subr.bf16.mxu1 %v1044_v39  ;;  %v2397_v12 = vld [vmem:[%s2907_s30 + $0x6c] ss:$16 sps:$4 sm:$0xff]   ;;  %v2399_v13 = vld [vmem:[%s2907_s30 + $0x60] ss:$16 sps:$4 sm:$0xff]   ;;  %v2400_v14 = vld [vmem:[%s2907_s30 + $0x68] ss:$16 sps:$4 sm:$0xff]  }
 0x1da   : > { %v2401_v15 = vld [vmem:[%s2907_s30 + $0x84] ss:$16 sps:$4 sm:$0xff]   ;;  %v2403_v16 = vld [vmem:[%s2907_s30 + $0x8c] ss:$16 sps:$4 sm:$0xff]   ;;  %v2405_v17 = vld [vmem:[%s2907_s30 + $0x80] ss:$16 sps:$4 sm:$0xff]  }
 0x1db   : > { %1983 = vmatpush3.bf16.msra.mxu0 %v1020_v40  ;;  %v2406_v18 = vld [vmem:[%s2907_s30 + $0x88] ss:$16 sps:$4 sm:$0xff]   ;;  %v2407_v19 = vld [vmem:[%s2907_s30 + $0xa4] ss:$16 sps:$4 sm:$0xff]   ;;  %v2409_v20 = vld [vmem:[%s2907_s30 + $0xac] ss:$16 sps:$4 sm:$0xff]  }
 0x1dc   : > { %2047 = vmatpush3.bf16.msra.mxu1 %v1036_v41  ;;  %1984 = vmatprep.subr.bf16.mxu0 %v1029_v42  ;;  %v2411_v21 = vld [vmem:[%s2907_s30 + $0xa0] ss:$16 sps:$4 sm:$0xff]   ;;  %v2412_v22 = vld [vmem:[%s2907_s30 + $0xa8] ss:$16 sps:$4 sm:$0xff]   ;;  %v2413_v23 = vld [vmem:[%s2907_s30 + $0xc4] ss:$16 sps:$4 sm:$0xff]  }
 0x1dd   : > { %2048 = vmatprep.subr.bf16.mxu1 %v1045_v44  ;;  %v2415_v24 = vld [vmem:[%s2907_s30 + $0xcc] ss:$16 sps:$4 sm:$0xff]   ;;  %v2417_v25 = vld [vmem:[%s2907_s30 + $0xc0] ss:$16 sps:$4 sm:$0xff]   ;;  %v2418_v26 = vld [vmem:[%s2907_s30 + $0xc8] ss:$16 sps:$4 sm:$0xff]  }
 0x1de   : > { %v2419_v27 = vld [vmem:[%s2907_s30 + $0xe4] ss:$16 sps:$4 sm:$0xff]   ;;  %v2421_v28 = vld [vmem:[%s2907_s30 + $0xec] ss:$16 sps:$4 sm:$0xff]   ;;  %v2423_v29 = vld [vmem:[%s2907_s30 + $0xe0] ss:$16 sps:$4 sm:$0xff]  }
 0x1df   : > { %1985 = vmatpush3.bf16.msra.mxu0 %v1021_v46  ;;  %v2424_v30 = vld [vmem:[%s2907_s30 + $0xe8] ss:$16 sps:$4 sm:$0xff]   ;;  %v2431_v2 = vld [vmem:[#allocation8 + $0x30] sm:$0xff]  }
 0x1e0   : > { %2049 = vmatpush3.bf16.msra.mxu1 %v1037_v47  ;;  %1986 = vmatprep.subr.bf16.mxu0 %v1030_v48  ;;  %v2432_v33 = vld [vmem:[#allocation8 + $0x38] sm:$0xff]  }
 0x1e1   : > { %2050 = vmatprep.subr.bf16.mxu1 %v1046_v49 }
 0x1e3   : > { %1987 = vmatpush3.bf16.msra.mxu0 %v1022_v50 }
 0x1e4   : > { %2051 = vmatpush3.bf16.msra.mxu1 %v1038_v51  ;;  %1988 = vmatprep.subr.bf16.mxu0 %v1031_v52 }
 0x1e5   : > { %2052 = vmatprep.subr.bf16.mxu1 %v1047_v53 }
 0x1e7   : > { %1989 = vmatpush3.bf16.msra.mxu0 %v1023_v54 }
 0x1e8   : > { %2053 = vmatpush3.bf16.msra.mxu1 %v1039_v55  ;;  %1990 = vmatprep.subr.bf16.mxu0 %v1032_v56 }
 0x1e9   : > { %2054 = vmatprep.subr.bf16.mxu1 %v1048_v57 }
 0x1eb   : > { %1991 = vmatpush3.bf16.msra.mxu0 %v1024_v58 }
 0x1ec   : > { %2055 = vmatpush3.bf16.msra.mxu1 %v1040_v59  ;;  %2120 = vmatprep.subr.bf16.mxu0 %v2425_v0 }
 0x1ed   : > { %2152 = vmatprep.subr.bf16.mxu1 %v2425_v0 }
 0x1ee   : > { %1242 = vmatmul.mubr.bf16.vlgmr.msra.gmra.mrb[0].mxu0 %v2377_v60 }
 0x1ef   : > { %1339 = vmatmul.mubr.bf16.vlgmr.msra.gmra.mrb[0].mxu1 %v2380_v61  ;;  %1249 = vmatprep.mubr.bf16.mxu0 %v2383_v62 }
 0x1f0   : > { %1346 = vmatprep.mubr.bf16.mxu1 %v2385_v63  ;;  %2121 = vmatpush3.bf16.msra.mxu0 %v2425_v0 }
 0x1f1   : > { %2160 = vmatpush3.bf16.msra.mxu1 %v2425_v0  ;;  %2122 = vmatprep.subr.bf16.mxu0 %v2426_v1 }
 0x1f2   : > { %2153 = vmatprep.subr.bf16.mxu1 %v2426_v1 }
 0x1f4   : > { %2123 = vmatpush3.bf16.msra.mxu0 %v2426_v1 }
 0x1f5   : > { %2161 = vmatpush3.bf16.msra.mxu1 %v2426_v1  ;;  %2124 = vmatprep.subr.bf16.mxu0 %v2427_v7 }
 0x1f6   : > { %1250 = vmatmul.mubr.bf16.gmra.mrb[4].mxu0 %v2387_v3  ;;  %2154 = vmatprep.subr.bf16.mxu1 %v2427_v7 }
 0x1f7   : > { %1347 = vmatmul.mubr.bf16.gmra.mrb[4].mxu1 %v2388_v4  ;;  %1257 = vmatprep.mubr.bf16.mxu0 %v2389_v5 }
 0x1f8   : > { %1354 = vmatprep.mubr.bf16.mxu1 %v2391_v6  ;;  %2125 = vmatpush3.bf16.msra.mxu0 %v2427_v7 }
 0x1f9   : > { %2162 = vmatpush3.bf16.msra.mxu1 %v2427_v7  ;;  %2126 = vmatprep.subr.bf16.mxu0 %v2428_v8 }
 0x1fa   : > { %2155 = vmatprep.subr.bf16.mxu1 %v2428_v8 }
 0x1fc   : > { %2127 = vmatpush3.bf16.msra.mxu0 %v2428_v8 }
 0x1fd   : > { %2163 = vmatpush3.bf16.msra.mxu1 %v2428_v8  ;;  %2128 = vmatprep.subr.bf16.mxu0 %v2429_v31 }
 0x1fe   : > { %1258 = vmatmul.mubr.bf16.gmra.mrb[8].mxu0 %v2393_v9  ;;  %2156 = vmatprep.subr.bf16.mxu1 %v2429_v31 }
 0x1ff   : > { %1355 = vmatmul.mubr.bf16.gmra.mrb[8].mxu1 %v2394_v10  ;;  %1265 = vmatprep.mubr.bf16.mxu0 %v2395_v11 }
 0x200   : > { %1362 = vmatprep.mubr.bf16.mxu1 %v2397_v12  ;;  %2129 = vmatpush3.bf16.msra.mxu0 %v2429_v31 }
 0x201   : > { %2164 = vmatpush3.bf16.msra.mxu1 %v2429_v31  ;;  %2130 = vmatprep.subr.bf16.mxu0 %v2430_v32 }
 0x202   : > { %2157 = vmatprep.subr.bf16.mxu1 %v2430_v32 }
 0x204   : > { %2131 = vmatpush3.bf16.msra.mxu0 %v2430_v32 }
 0x205   : > { %2165 = vmatpush3.bf16.msra.mxu1 %v2430_v32  ;;  %2132 = vmatprep.subr.bf16.mxu0 %v2431_v2 }
 0x206   : > { %1266 = vmatmul.mubr.bf16.gmra.mrb[12].mxu0 %v2399_v13  ;;  %2158 = vmatprep.subr.bf16.mxu1 %v2431_v2 }
 0x207   : > { %1363 = vmatmul.mubr.bf16.gmra.mrb[12].mxu1 %v2400_v14  ;;  %1273 = vmatprep.mubr.bf16.mxu0 %v2401_v15 }
 0x208   : > { %1370 = vmatprep.mubr.bf16.mxu1 %v2403_v16  ;;  %2133 = vmatpush3.bf16.msra.mxu0 %v2431_v2 }
 0x209   : > { %2166 = vmatpush3.bf16.msra.mxu1 %v2431_v2  ;;  %2134 = vmatprep.subr.bf16.mxu0 %v2432_v33 }
 0x20a   : > { %2159 = vmatprep.subr.bf16.mxu1 %v2432_v33 }
 0x20c   : > { %2135 = vmatpush3.bf16.msra.mxu0 %v2432_v33 }
 0x20d   : > { %2167 = vmatpush3.bf16.msra.mxu1 %v2432_v33 }
 0x20e   : > { %1274 = vmatmul.mubr.bf16.gmra.mrb[16].mxu0 %v2405_v17 }
 0x20f   : > { %1371 = vmatmul.mubr.bf16.gmra.mrb[16].mxu1 %v2406_v18  ;;  %1281 = vmatprep.mubr.bf16.mxu0 %v2407_v19 }
 0x210   : > { %1378 = vmatprep.mubr.bf16.mxu1 %v2409_v20 }
 0x216   : > { %1282 = vmatmul.mubr.bf16.gmra.mrb[20].mxu0 %v2411_v21 }
 0x217   : > { %1379 = vmatmul.mubr.bf16.gmra.mrb[20].mxu1 %v2412_v22  ;;  %1289 = vmatprep.mubr.bf16.mxu0 %v2413_v23 }
 0x218   : > { %1386 = vmatprep.mubr.bf16.mxu1 %v2415_v24 }
 0x21e   : > { %1290 = vmatmul.mubr.bf16.gmra.mrb[24].mxu0 %v2417_v25 }
 0x21f   : > { %1387 = vmatmul.mubr.bf16.gmra.mrb[24].mxu1 %v2418_v26  ;;  %1297 = vmatprep.mubr.bf16.mxu0 %v2419_v27 }
 0x220   : > { %1394 = vmatprep.mubr.bf16.mxu1 %v2421_v28 }
 0x226   : > { %1298 = vmatmul.mubr.bf16.gmra.mrb[28].mxu0 %v2423_v29 }
 0x227   : > { %1395 = vmatmul.mubr.bf16.gmra.mrb[28].mxu1 %v2424_v30 }
 0x2c1   : > { %v1992_v34 = vpop.f32.mrb[0].mxu0 }
 0x2c2   : > { %v2056_v35 = vpop.f32.mrb[0].mxu1  ;;  %v1993_v36 = vpop.f32.mrb[1].mxu0 }
 0x2c3   : > { %v2057_v37 = vpop.f32.mrb[1].mxu1  ;;  %v1994_v38 = vadd.f32 %v1993_v36, %v1992_v34  ;;  %v1995_v40 = vpop.f32.mrb[2].mxu0 }
 0x2c4   : > { %v2058_v39 = vadd.f32 %v2057_v37, %v2056_v35  ;;  %v2059_v41 = vpop.f32.mrb[2].mxu1  ;;  %v1996_v42 = vpop.f32.mrb[3].mxu0 }
 0x2c5   : > { %v2060_v43 = vpop.f32.mrb[3].mxu1  ;;  %v1997_v45 = vadd.f32 %v1996_v42, %v1995_v40 }
 0x2c6   : > { %v1341_v44 = vadd.f32 %v2058_v39, %v1994_v38  ;;  %v2061_v46 = vadd.f32 %v2060_v43, %v2059_v41 }
 0x2c8   : > { %v1344_v47 = vadd.f32 %v2061_v46, %v1997_v45 }
 0x2c9   : > { %v1998_v48 = vpop.f32.mrb[4].mxu0 }
 0x2ca   : > { %v2062_v49 = vpop.f32.mrb[4].mxu1  ;;  %v1403_v50 = vpack.c.bf16 %v1344_v47, %v1341_v44  ;;  %v1999_v51 = vpop.f32.mrb[5].mxu0 }
 0x2cb   : > { %v2063_v52 = vpop.f32.mrb[5].mxu1  ;;  %v2000_v53 = vadd.f32 %v1999_v51, %v1998_v48  ;;  %v2001_v55 = vpop.f32.mrb[6].mxu0 }
 0x2cc   : > { %v2064_v54 = vadd.f32 %v2063_v52, %v2062_v49  ;;  %v2065_v56 = vpop.f32.mrb[6].mxu1  ;;  %2136 = vmatprep.mubr.bf16.mxu0 %v1403_v50  ;;  %v2002_v57 = vpop.f32.mrb[7].mxu0 }
 0x2cd   : > { %v2066_v58 = vpop.f32.mrb[7].mxu1  ;;  %v2003_v60 = vadd.f32 %v2002_v57, %v2001_v55 }
 0x2ce   : > { %v1349_v59 = vadd.f32 %v2064_v54, %v2000_v53  ;;  %v2067_v61 = vadd.f32 %v2066_v58, %v2065_v56 }
 0x2d0   : > { %v1352_v62 = vadd.f32 %v2067_v61, %v2003_v60 }
 0x2d1   : > { %v2004_v0 = vpop.f32.mrb[8].mxu0 }
 0x2d2   : > { %v1404_v63 = vpack.c.bf16 %v1352_v62, %v1349_v59  ;;  %v2068_v1 = vpop.f32.mrb[8].mxu1  ;;  %v2005_v3 = vpop.f32.mrb[9].mxu0 }
 0x2d3   : > { %v2069_v4 = vpop.f32.mrb[9].mxu1  ;;  %v2006_v5 = vadd.f32 %v2005_v3, %v2004_v0  ;;  %v2007_v7 = vpop.f32.mrb[10].mxu0 }
 0x2d4   : > { %v2070_v6 = vadd.f32 %v2069_v4, %v2068_v1  ;;  %v2071_v8 = vpop.f32.mrb[10].mxu1  ;;  %2137 = vmatmul.mubr.bf16.vlgmr.msra.gmra.mrb[32].mxu0 %v1404_v63  ;;  %v2008_v9 = vpop.f32.mrb[11].mxu0 }
 0x2d5   : > { %v2072_v10 = vpop.f32.mrb[11].mxu1  ;;  %v2009_v12 = vadd.f32 %v2008_v9, %v2007_v7 }
 0x2d6   : > { %v1357_v11 = vadd.f32 %v2070_v6, %v2006_v5  ;;  %v2073_v13 = vadd.f32 %v2072_v10, %v2071_v8 }
 0x2d8   : > { %v1360_v14 = vadd.f32 %v2073_v13, %v2009_v12 }
 0x2d9   : > { %v2010_v15 = vpop.f32.mrb[12].mxu0 }
 0x2da   : > { %v2074_v16 = vpop.f32.mrb[12].mxu1  ;;  %v1405_v17 = vpack.c.bf16 %v1360_v14, %v1357_v11  ;;  %v2011_v18 = vpop.f32.mrb[13].mxu0 }
 0x2db   : > { %v2075_v19 = vpop.f32.mrb[13].mxu1  ;;  %v2012_v20 = vadd.f32 %v2011_v18, %v2010_v15  ;;  %v2013_v22 = vpop.f32.mrb[14].mxu0 }
 0x2dc   : > { %v2076_v21 = vadd.f32 %v2075_v19, %v2074_v16  ;;  %v2077_v23 = vpop.f32.mrb[14].mxu1  ;;  %2140 = vmatprep.mubr.bf16.mxu0 %v1405_v17  ;;  %v2014_v24 = vpop.f32.mrb[15].mxu0 }
 0x2dd   : > { %v2078_v25 = vpop.f32.mrb[15].mxu1  ;;  %v2015_v27 = vadd.f32 %v2014_v24, %v2013_v22 }
 0x2de   : > { %v1365_v26 = vadd.f32 %v2076_v21, %v2012_v20  ;;  %v2079_v28 = vadd.f32 %v2078_v25, %v2077_v23 }
 0x2e0   : > { %v1368_v29 = vadd.f32 %v2079_v28, %v2015_v27  ;;  %v1831_v27 = vld [vmem:[%s3116_s4] ss:$0 sm:$0xff] }
 0x2e1   : > { %v2016_v30 = vpop.f32.mrb[16].mxu0 }
 0x2e2   : > { %v2080_v31 = vpop.f32.mrb[16].mxu1  ;;  %v1406_v32 = vpack.c.bf16 %v1368_v29, %v1365_v26  ;;  %v2017_v2 = vpop.f32.mrb[17].mxu0 }
 0x2e3   : > { %v2081_v33 = vpop.f32.mrb[17].mxu1  ;;  %v2018_v34 = vadd.f32 %v2017_v2, %v2016_v30  ;;  %v2019_v36 = vpop.f32.mrb[18].mxu0 }
 0x2e4   : > { %v2082_v35 = vadd.f32 %v2081_v33, %v2080_v31  ;;  %v2083_v37 = vpop.f32.mrb[18].mxu1  ;;  %2141 = vmatmul.mubr.bf16.gmra.mrb[36].mxu0 %v1406_v32  ;;  %v2020_v38 = vpop.f32.mrb[19].mxu0 }
 0x2e5   : > { %v2084_v39 = vpop.f32.mrb[19].mxu1  ;;  %v2021_v41 = vadd.f32 %v2020_v38, %v2019_v36 }
 0x2e6   : > { %v1373_v40 = vadd.f32 %v2082_v35, %v2018_v34  ;;  %v2085_v42 = vadd.f32 %v2084_v39, %v2083_v37 }
 0x2e8   : > { %v1376_v43 = vadd.f32 %v2085_v42, %v2021_v41 }
 0x2e9   : > { %v2022_v44 = vpop.f32.mrb[20].mxu0 }
 0x2ea   : > { %v2086_v45 = vpop.f32.mrb[20].mxu1  ;;  %v1407_v46 = vpack.c.bf16 %v1376_v43, %v1373_v40  ;;  %v2023_v47 = vpop.f32.mrb[21].mxu0 }
 0x2eb   : > { %v2087_v48 = vpop.f32.mrb[21].mxu1  ;;  %v2024_v49 = vadd.f32 %v2023_v47, %v2022_v44  ;;  %v2025_v51 = vpop.f32.mrb[22].mxu0 }
 0x2ec   : > { %v2088_v50 = vadd.f32 %v2087_v48, %v2086_v45  ;;  %v2089_v52 = vpop.f32.mrb[22].mxu1  ;;  %2144 = vmatprep.mubr.bf16.mxu1 %v1407_v46  ;;  %v2026_v53 = vpop.f32.mrb[23].mxu0 }
 0x2ed   : > { %v2090_v54 = vpop.f32.mrb[23].mxu1  ;;  %v2027_v56 = vadd.f32 %v2026_v53, %v2025_v51 }
 0x2ee   : > { %v1381_v55 = vadd.f32 %v2088_v50, %v2024_v49  ;;  %v2091_v57 = vadd.f32 %v2090_v54, %v2089_v52 }
 0x2f0   : > { %v1384_v58 = vadd.f32 %v2091_v57, %v2027_v56 }
 0x2f1   : > { %v2028_v60 = vpop.f32.mrb[24].mxu0 }
 0x2f2   : > { %v1408_v59 = vpack.c.bf16 %v1384_v58, %v1381_v55  ;;  %v2092_v61 = vpop.f32.mrb[24].mxu1  ;;  %v2029_v62 = vpop.f32.mrb[25].mxu0 }
 0x2f3   : > { %v2093_v63 = vpop.f32.mrb[25].mxu1  ;;  %v2030_v0 = vadd.f32 %v2029_v62, %v2028_v60  ;;  %v2031_v3 = vpop.f32.mrb[26].mxu0 }
 0x2f4   : > { %v2094_v1 = vadd.f32 %v2093_v63, %v2092_v61  ;;  %v2095_v4 = vpop.f32.mrb[26].mxu1  ;;  %2145 = vmatmul.mubr.bf16.vlgmr.msra.gmra.mrb[32].mxu1 %v1408_v59  ;;  %v2032_v5 = vpop.f32.mrb[27].mxu0 }
 0x2f5   : > { %v2096_v6 = vpop.f32.mrb[27].mxu1  ;;  %v2033_v8 = vadd.f32 %v2032_v5, %v2031_v3 }
 0x2f6   : > { %v1389_v7 = vadd.f32 %v2094_v1, %v2030_v0  ;;  %v2097_v9 = vadd.f32 %v2096_v6, %v2095_v4 }
 0x2f8   : > { %v1392_v10 = vadd.f32 %v2097_v9, %v2033_v8 }
 0x2f9   : > { %v2034_v11 = vpop.f32.mrb[28].mxu0 }
 0x2fa   : > { %v2098_v12 = vpop.f32.mrb[28].mxu1  ;;  %v1409_v13 = vpack.c.bf16 %v1392_v10, %v1389_v7  ;;  %v2035_v14 = vpop.f32.mrb[29].mxu0 }
 0x2fb   : > { %v2099_v15 = vpop.f32.mrb[29].mxu1  ;;  %v2036_v16 = vadd.f32 %v2035_v14, %v2034_v11  ;;  %v2037_v18 = vpop.f32.mrb[30].mxu0 }
 0x2fc   : > { %v2100_v17 = vadd.f32 %v2099_v15, %v2098_v12  ;;  %v2101_v19 = vpop.f32.mrb[30].mxu1  ;;  %2148 = vmatprep.mubr.bf16.mxu1 %v1409_v13  ;;  %v2038_v20 = vpop.f32.mrb[31].mxu0 }
 0x2fd   : > { %v2102_v21 = vpop.f32.mrb[31].mxu1  ;;  %v2039_v23 = vadd.f32 %v2038_v20, %v2037_v18 }
 0x2fe   : > { %v1397_v22 = vadd.f32 %v2100_v17, %v2036_v16  ;;  %v2103_v24 = vadd.f32 %v2102_v21, %v2101_v19 }
 0x300   : > { %v1400_v25 = vadd.f32 %v2103_v24, %v2039_v23 }
 0x302   : > { %v1410_v26 = vpack.c.bf16 %v1400_v25, %v1397_v22 }
 0x304   : > { %2149 = vmatmul.mubr.bf16.gmra.mrb[36].mxu1 %v1410_v26 }
 0x3a7   : > { %v2138_v28 = vpop.f32.mrb[32].mxu0 }
 0x3a8   : > { %v1525_v29 = vadd.f32 %v2138_v28, %v1831_v27  ;;  %v1516_v30 = vpop.f32.mrb[33].mxu0 }
 0x3a9   : > { %v1517_v31 = vadd.f32 %v1831_v27, %v1516_v30  ;;  %v2139_v32 = vpop.f32.mrb[34].mxu0 }
 0x3aa   : > { %1581 = vst [vmem:[%s2920_s11 + $0x10] sm:$0xff] %v1525_v29  ;;  %v1528_v2 = vadd.f32 %v2139_v32, %v1831_v27  ;;  %v1519_v33 = vpop.f32.mrb[35].mxu0 }
 0x3ab   : > { %1579 = vst [vmem:[%s2920_s11] sm:$0xff] %v1517_v31  ;;  %v1520_v34 = vadd.f32 %v1831_v27, %v1519_v33 }
 0x3ac   : > { %1582 = vst [vmem:[%s2920_s11 + $0x18] sm:$0xff] %v1528_v2 }
 0x3ad   : > { %1580 = vst [vmem:[%s2920_s11 + $0x8] sm:$0xff] %v1520_v34 }
 0x3b7   : > { %v2142_v35 = vpop.f32.mrb[36].mxu0 }
 0x3b8   : > { %v1541_v36 = vadd.f32 %v2142_v35, %v1831_v27  ;;  %v1532_v37 = vpop.f32.mrb[37].mxu0 }
 0x3b9   : > { %v1533_v38 = vadd.f32 %v1831_v27, %v1532_v37  ;;  %v2143_v39 = vpop.f32.mrb[38].mxu0 }
 0x3ba   : > { %1585 = vst [vmem:[%s2920_s11 + $0x30] sm:$0xff] %v1541_v36  ;;  %v1544_v40 = vadd.f32 %v2143_v39, %v1831_v27  ;;  %v1535_v41 = vpop.f32.mrb[39].mxu0 }
 0x3bb   : > { %1583 = vst [vmem:[%s2920_s11 + $0x20] sm:$0xff] %v1533_v38  ;;  %v1536_v42 = vadd.f32 %v1831_v27, %v1535_v41 }
 0x3bc   : > { %1586 = vst [vmem:[%s2920_s11 + $0x38] sm:$0xff] %v1544_v40 }
 0x3bd   : > { %1584 = vst [vmem:[%s2920_s11 + $0x28] sm:$0xff] %v1536_v42 }
 0x3c7   : > { %v2146_v43 = vpop.f32.mrb[32].mxu1 }
 0x3c8   : > { %v1557_v44 = vadd.f32 %v2146_v43, %v1831_v27  ;;  %v1548_v45 = vpop.f32.mrb[33].mxu1 }
 0x3c9   : > { %v1549_v46 = vadd.f32 %v1831_v27, %v1548_v45  ;;  %v2147_v47 = vpop.f32.mrb[34].mxu1 }
 0x3ca   : > { %1589 = vst [vmem:[%s2920_s11 + $0x50] sm:$0xff] %v1557_v44  ;;  %v1560_v48 = vadd.f32 %v2147_v47, %v1831_v27  ;;  %v1551_v49 = vpop.f32.mrb[35].mxu1 }
 0x3cb   : > { %1587 = vst [vmem:[%s2920_s11 + $0x40] sm:$0xff] %v1549_v46  ;;  %v1552_v50 = vadd.f32 %v1831_v27, %v1551_v49 }
 0x3cc   : > { %1590 = vst [vmem:[%s2920_s11 + $0x58] sm:$0xff] %v1560_v48 }
 0x3cd   : > { %1588 = vst [vmem:[%s2920_s11 + $0x48] sm:$0xff] %v1552_v50 }
 0x3d7   : > { %v2150_v51 = vpop.f32.mrb[36].mxu1 }
 0x3d8   : > { %v1573_v52 = vadd.f32 %v2150_v51, %v1831_v27  ;;  %v1564_v53 = vpop.f32.mrb[37].mxu1 }
 0x3d9   : > { %v1565_v54 = vadd.f32 %v1831_v27, %v1564_v53  ;;  %v2151_v55 = vpop.f32.mrb[38].mxu1 }
 0x3da   : > { %1593 = vst [vmem:[%s2920_s11 + $0x70] sm:$0xff] %v1573_v52  ;;  %v1576_v56 = vadd.f32 %v2151_v55, %v1831_v27  ;;  %v1567_v57 = vpop.f32.mrb[39].mxu1 }
 0x3db   : > { %1591 = vst [vmem:[%s2920_s11 + $0x60] sm:$0xff] %v1565_v54  ;;  %v1568_v58 = vadd.f32 %v1831_v27, %v1567_v57 }
 0x3dc   : > { %1594 = vst [vmem:[%s2920_s11 + $0x78] sm:$0xff] %v1576_v56 }
 0x3dd   : > { %1592 = vst [vmem:[%s2920_s11 + $0x68] sm:$0xff] %v1568_v58 }
 0x3de PF: > { %s3150_s12 = sld [smem:[#allocation15_spill]]  ;;  %s1603_s29 = smul.u32 %s2629_s24, %s2633_s25 }
 0x3df   : > { %s1610_s13 = sshll.u32 %s2920_s11, 4  ;;  %s3151_s6 = sld [smem:[#allocation19_spill]]  ;;  %s3042_s13 = int_to_ptr.vmem [resolvable:$true] %s1610_s13 }
 0x3e0   : > { %s1847_s5 = sshll.u32 %s1603_s29, 11  ;;  %s3051_s16 = scalar_lea.sflag [#allocation5], %s284_s1 }
 0x3e1   : > { %s2519_s21 = scalar_lea.vmem %s3042_s13, 2048  ;;  %s2654_s24 = smov [#allocation9]  }
 0x3e2   : > { %p2520_p3 = scmp.ne.s32.totalorder %s3042_s13, %s2519_s21  ;;  %s2523_s25 = sshll.u32 %s2654_s24, 4  ;;  %s2524_s25 = int_to_ptr.vmem [resolvable:$false] %s2523_s25 }
 0x3e3   : > { %s2525_s11 = scalar_lea.vmem %s2524_s25, 4096  ;;  %p2526_p11 = scmp.lt.s32.totalorder %s3042_s13, %s2524_s25 }
 0x3e4   : > { %p3152_p13 = scmp.ne.s32.totalorder %s3150_s12, 0  ;;  %p2527_p5 = scmp.lt.s32.totalorder %s2525_s11, %s2519_s21 }
 0x3e5   : > { %s3047_s8 = scalar_lea.hbm %s3151_s6, %s1847_s5 }
 0x3e6   : > { %p2521_p7 = pnand %p2520_p3, %p3152_p13  ;;  %p2528_p8 = por %p2527_p5, %p2526_p11 }
 0x3e8   : > { %p2522_p9 = pneg %p2521_p7 }
 0x3ea   : > { %p2529_p12 = pnand %p2528_p8, %p2522_p9 }
 0x3ec   : > { %2532 = shalt.err (!%p2529_p12)
}
 0x3ed   : > { %s2533_s1 = scalar_lea.hbm %s3047_s8, 2048  ;;  %s2537_s27 = scalar_lea.hbm %s3151_s6, 8192 }
 0x3ee   : > { %p2534_p2 = scmp.ne.s32.totalorder %s3047_s8, %s2533_s1  ;;  %p2538_p0 = scmp.lt.u32.totalorder %s3047_s8, %s3151_s6 }
 0x3ef   : > { %p2539_p4 = scmp.lt.u32.totalorder %s2537_s27, %s2533_s1  ;;  %p2541_p3 = scmp.lt.u32.totalorder %s2533_s1, %s3047_s8 }
 0x3f0   : > { %p2535_p6 = pnand %p2534_p2, %p3152_p13 }
 0x3f1   : > { %p2540_p1 = por %p2539_p4, %p2538_p0 }
 0x3f2   : > { %p2536_p10 = pneg %p2535_p6 }
 0x3f3   : > { %p2542_p7 = por %p2541_p3, %p2540_p1 }
 0x3f5   : > { %p2543_p9 = pnand %p2542_p7, %p2536_p10 }
 0x3f7   : > { %2546 = shalt.err (!%p2543_p9)
}
 0x3f8   : > { %s2655_s5 = smov 128   ;;  %s2656_s30 = smov 8  }
 0x3f9   : > { %2178 = dma.vmem_to_hbm [thread:$0]  (%p3152_p13), %s3042_s13, 2048, %s3047_s8, %s3051_s16, %s2655_s5, %s2655_s5, %s2656_s30  }
 0x3fa PF: > { %s3153_s3 = sld [smem:[#allocation13_spill]]  ;;  %s3154_s21 = sld [smem:[#allocation16_spill]] }
 0x3fb   : > { %p2200_p11 = scmp.ge.s32.totalorder %s2645_s28, 2 }
 0x400   : > { %s1625_s24 = sand.u32 1, %s3153_s3   ;;  %p3155_p5 = scmp.ne.s32.totalorder %s3154_s21, 0 }
 0x401   : > { %s1626_s25 = scalar_lea.sflag [#allocation5], %s1625_s24 }
 0x402   : > { %p2192_p8 = pnand %p2200_p11, %p3155_p5 }
 0x404   : > { %2600 = dma.done.wait (!%p2192_p8), %s1626_s25, 2048  }
 0x405   : > { %2602 = vsyncadd (!%p2192_p8), %s1626_s25, 4294965248  ;;  %s22_s28 = sadd.s32 1, %s2645_s28   ;;  %s3156_s25 = sld [smem:[#allocation14_spill]] }
 0x406   : > { %p19_p12 = scmp.ge.s32.totalorder %s22_s28, 10   ;;  %s3157_s18 = smov %s2609_s19 }
 0x407   : > { %s3158_s19 = smov %s2613_s20  ;;  %s3159_s20 = smov %s2864_s14 }
 0x408   : > { %s3160_s21 = smov %s2621_s22  ;;  %s3161_s22 = smov %s2625_s23 }
 0x409   : > { %s3162_s23 = smov %s2850_s17  ;;  %s3163_s24 = smov %s2637_s26 }
 0x40a   : > { %s3164_s26 = smov %s3167_s9  ;;  %s3165_s27 = smov %s3171_s7 }
 0x40b   :  { %21 = sbr.rel (!%p19_p12) target bundleno = 14 (0xe), region = 102 }
 0x412   :  { %1631 = vsyncpa [#allocation4], 1 }
 0x413   :  { %1633 = vsyncpa [#allocation4 + $0x1], 1 }
 0x414   :  { %1634 = vsyncpa [#allocation7], 1 }
 0x415   :  { %1635 = vsyncpa [#allocation5], 1 }
 0x416   :  { %1637 = vsyncpa [#allocation5 + $0x1], 1 }

</bundles_post_ra>
